<compile_context>
chip_gen: v5e
topology: v5e:2x2
jax: 0.10.0
libtpu: 0.0.40
codegen_flags: <defaults>
</compile_context>

<pallas_src>
import functools

import jax
import jax.numpy as jnp
import numpy as np
from jax.experimental import pallas as pl
from jax.experimental.pallas import tpu as pltpu


# -----------------------------------------------------------------------------
# Fused kernel body (one batch element per grid step), lane-dense (M, WC) layout
# -----------------------------------------------------------------------------
def _fused_block_kernel(x_ref, shift_ref, w1_ref, w2_ref, w3_ref, sb_ref, o_ref, *, H):
    # x_ref    : (1, M, WC)  activations; rows = (t, h), cols = (w, c); M = T*H, WC = W*C
    # shift_ref: (2, M, M)   row-shift + frame-boundary-mask matrices (h-1 tap, h+1 tap)
    # w1_ref   : (3, WC, WC) banded spatial-conv1 weights, one matrix per kh tap
    # w2_ref   : (3, WC, WC) block-diagonal temporal-conv2 weights, one per kt tap
    # w3_ref   : (3, WC, WC) banded spatial-conv3 weights
    # sb_ref   : (6, WC)     folded BN rows [s1, b1, s2, b2, s3, b3], tiled over w
    # o_ref    : (1, M, WC)  output
    _, M, WC = o_ref.shape
    f32 = jnp.float32

    x = x_ref[0].astype(f32)                         # (M, WC)
    sh_prev = shift_ref[0]                           # (M, M): row r <- row r-1, zero at h==0
    sh_next = shift_ref[1]                           # (M, M): row r <- row r+1, zero at h==H-1

    def spatial_conv(a, w_ref):
        # 3x3 spatial conv as 5 full-lane MXU matmuls:
        #   h+-1 taps via shift matrices (H zero-padding built in),
        #   w taps / W zero-padding built into the banded weights.
        t_up = jnp.dot(sh_prev, a, preferred_element_type=f32)   # rows at h-1
        t_dn = jnp.dot(sh_next, a, preferred_element_type=f32)   # rows at h+1
        acc = jnp.dot(t_up, w_ref[0], preferred_element_type=f32)
        acc = acc + jnp.dot(a, w_ref[1], preferred_element_type=f32)
        acc = acc + jnp.dot(t_dn, w_ref[2], preferred_element_type=f32)
        return acc                                    # (M, WC) f32

    # ---- Stage 1: out1 = relu(BN1(conv_spatial_3x3(x))) ---------------------
    out1 = jnp.maximum(
        spatial_conv(x, w1_ref) * sb_ref[0:1, :] + sb_ref[1:2, :], 0.0)

    # ---- Stage 2: out = relu(out1 + BN2(conv_temporal_3(out1))) -------------
    # Frame shifts are +-H rows (sublane-tile aligned); the zero frame supplies
    # the temporal zero padding.
    zfrm = jnp.zeros((H, WC), f32)
    t_prev = jnp.concatenate([zfrm, out1[:M - H, :]], axis=0)     # frame t-1 tap
    t_next = jnp.concatenate([out1[H:, :], zfrm], axis=0)          # frame t+1 tap
    acc2 = jnp.dot(t_prev, w2_ref[0], preferred_element_type=f32)
    acc2 = acc2 + jnp.dot(out1, w2_ref[1], preferred_element_type=f32)
    acc2 = acc2 + jnp.dot(t_next, w2_ref[2], preferred_element_type=f32)
    out = jnp.maximum(out1 + acc2 * sb_ref[2:3, :] + sb_ref[3:4, :], 0.0)

    # ---- Stage 3: y = relu(BN3(conv_spatial_3x3(out)) + x) ------------------
    out3 = spatial_conv(out, w3_ref) * sb_ref[4:5, :] + sb_ref[5:6, :]
    o_ref[0] = jnp.maximum(out3 + x, 0.0).astype(o_ref.dtype)


# -----------------------------------------------------------------------------
# Host-side weight preprocessing (banded / block-diagonal / shift matrices)
# -----------------------------------------------------------------------------
def _banded_spatial_weights(w, W):
    """(3,3,C,C) (kh,kw,ci,co) -> (3, W*C, W*C) banded matrices over (w_in,ci)->(w_out,co).

    The W zero-padding of the 3x3 conv is encoded by the missing bands at the
    w_out = 0 / W-1 edges."""
    C = w.shape[-1]
    sel = np.zeros((3, W, W), np.float32)             # (kw, w_in, w_out)
    for kw in range(3):
        for wo in range(W):
            wi = wo + kw - 1
            if 0 <= wi < W:
                sel[kw, wi, wo] = 1.0
    b = jnp.einsum('kio,hkcf->hicof', jnp.asarray(sel), w.astype(jnp.float32))
    return b.reshape(3, W * C, W * C)                 # rows (w_in,ci), cols (w_out,co)


def _blockdiag_temporal_weights(w2, W):
    """(3,C,C) (kt,ci,co) -> (3, W*C, W*C) block-diagonal (one w2[kt] block per w)."""
    C = w2.shape[-1]
    eye = jnp.asarray(np.eye(W, dtype=np.float32))
    d = jnp.einsum('io,tcf->ticof', eye, w2.astype(jnp.float32))
    return d.reshape(3, W * C, W * C)


def _row_shift_mats(T, H):
    """(2, M, M) shift+mask matrices: [0] row r <- r-1 (zero at h==0),
    [1] row r <- r+1 (zero at h==H-1).  Supplies the H zero-padding."""
    M = T * H
    s = np.zeros((2, M, M), np.float32)
    for r in range(M):
        if r % H != 0:
            s[0, r, r - 1] = 1.0
        if r % H != H - 1:
            s[1, r, r + 1] = 1.0
    return jnp.asarray(s)


# -----------------------------------------------------------------------------
# Wrapper
# -----------------------------------------------------------------------------
def basic_block_p3d(x, params):
    """Fused BasicBlockP3D forward (stride=1, downsample=None, inplanes==planes).

    x: (N, T, H, W, C) channel-last; params = ((w1,s1,b1),(w2,s2,b2),(w3,s3,b3))
    with w1,w3: (3,3,C,C), w2: (3,C,C) and folded-BN scale/bias vectors of shape (C,).
    """
    (w1, s1, b1), (w2, s2, b2), (w3, s3, b3) = params
    N, T, H, W, C = x.shape
    assert w1.shape == (3, 3, C, C) and w3.shape == (3, 3, C, C) and w2.shape == (3, C, C)
    WC, M = W * C, T * H

    B1 = _banded_spatial_weights(w1, W)               # (3, WC, WC)
    D2 = _blockdiag_temporal_weights(w2, W)           # (3, WC, WC)
    B3 = _banded_spatial_weights(w3, W)               # (3, WC, WC)
    shifts = _row_shift_mats(T, H)                    # (2, M, M)
    # BN scale/bias tiled to the lane-dense (w, c) column layout.
    sb = jnp.stack([jnp.tile(v.astype(jnp.float32), W)
                    for v in (s1, b1, s2, b2, s3, b3)], axis=0)   # (6, WC)

    # Free, contiguous reshape to the lane-dense layout (N, T*H, W*C).
    x2 = x.reshape(N, M, WC)

    y2 = pl.pallas_call(
        functools.partial(_fused_block_kernel, H=H),
        out_shape=jax.ShapeDtypeStruct((N, M, WC), x.dtype),
        grid=(N,),
        in_specs=[
            pl.BlockSpec((1, M, WC), lambda n: (n, 0, 0)),
            pl.BlockSpec((2, M, M), lambda n: (0, 0, 0)),
            pl.BlockSpec((3, WC, WC), lambda n: (0, 0, 0)),
            pl.BlockSpec((3, WC, WC), lambda n: (0, 0, 0)),
            pl.BlockSpec((3, WC, WC), lambda n: (0, 0, 0)),
            pl.BlockSpec((6, WC), lambda n: (0, 0)),
        ],
        out_specs=pl.BlockSpec((1, M, WC), lambda n: (n, 0, 0)),
        compiler_params=pltpu.CompilerParams(
            dimension_semantics=("parallel",),        # batch axis -> both TCs on v7x
        ),
    )(x2, shifts, B1, D2, B3, sb)

    return y2.reshape(N, T, H, W, C)


# -----------------------------------------------------------------------------
# Pure-JAX reference (for correctness check)
# -----------------------------------------------------------------------------
def _conv3d_nhwc(x, w, padding):
    return jax.lax.conv_general_dilated(
        x, w, window_strides=(1, 1, 1), padding=padding,
        dimension_numbers=("NDHWC", "DHWIO", "NDHWC"))


def basic_block_p3d_ref(x, params):
    (w1, s1, b1), (w2, s2, b2), (w3, s3, b3) = params
    out1 = _conv3d_nhwc(x, w1[None], [(0, 0), (1, 1), (1, 1)]) * s1 + b1
    out1 = jnp.maximum(out1, 0.0)
    out2 = _conv3d_nhwc(out1, w2[:, None, None], [(1, 1), (0, 0), (0, 0)]) * s2 + b2
    out = jnp.maximum(out1 + out2, 0.0)
    out3 = _conv3d_nhwc(out, w3[None], [(0, 0), (1, 1), (1, 1)]) * s3 + b3
    return jnp.maximum(out3 + x, 0.0)


# -----------------------------------------------------------------------------
# Deterministic parameter construction
# (BN folded: scale = gamma/sqrt(var+eps), bias = beta - mean*scale)
# -----------------------------------------------------------------------------
def make_params(key, inplanes, planes):
    ks = jax.random.split(key, 15)
    eps = 1e-5

    def bn(k0, k1, k2, k3, c):
        gamma = 1.0 + 0.1 * jax.random.normal(k0, (c,), jnp.float32)
        beta = 0.1 * jax.random.normal(k1, (c,), jnp.float32)
        mean = 0.1 * jax.random.normal(k2, (c,), jnp.float32)
        var = 1.0 + 0.05 * jnp.abs(jax.random.normal(k3, (c,), jnp.float32))
        scale = gamma / jnp.sqrt(var + eps)
        bias = beta - mean * scale
        return scale, bias

    w1 = 0.1 * jax.random.normal(ks[0], (3, 3, inplanes, planes), jnp.float32)
    s1, b1 = bn(ks[1], ks[2], ks[3], ks[4], planes)
    w2 = 0.1 * jax.random.normal(ks[5], (3, planes, planes), jnp.float32)
    s2, b2 = bn(ks[6], ks[7], ks[8], ks[9], planes)
    w3 = 0.1 * jax.random.normal(ks[10], (3, 3, planes, planes), jnp.float32)
    s3, b3 = bn(ks[11], ks[12], ks[13], ks[14], planes)
    return (w1, s1, b1), (w2, s2, b2), (w3, s3, b3)


if __name__ == "__main__":
    N, C, T, H, W = 2, 8, 8, 16, 16   # inplanes = planes = 8, stride = 1, downsample = None
    key = jax.random.PRNGKey(0)
    kx, kp = jax.random.split(key)

    # Input in NTHWC layout (equivalent to PyTorch NCDHW (N, C, T, H, W) transposed).
    x = jax.random.normal(kx, (N, T, H, W, C), jnp.float32)
    params = make_params(kp, C, C)

    y = jax.jit(basic_block_p3d)(x, params)
    y = jax.block_until_ready(y)

    y_ref = basic_block_p3d_ref(x, params)
    np.testing.assert_allclose(np.asarray(y), np.asarray(y_ref), rtol=1e-4, atol=1e-4)

    print("KERNEL_OK")
</pallas_src>

<mosaic_0001>
module attributes {stable_mosaic.version = 11 : i64} {
  func.func @_fused_block_kernel(%arg0: i32, %arg1: memref<1x128x128xf32, #tpu.memory_space<vmem>>, %arg2: memref<2x128x128xf32, #tpu.memory_space<vmem>>, %arg3: memref<3x128x128xf32, #tpu.memory_space<vmem>>, %arg4: memref<3x128x128xf32, #tpu.memory_space<vmem>>, %arg5: memref<3x128x128xf32, #tpu.memory_space<vmem>>, %arg6: memref<6x128xf32, #tpu.memory_space<vmem>>, %arg7: memref<1x128x128xf32, #tpu.memory_space<vmem>>) attributes {dimension_semantics = [#tpu.dimension_semantics<parallel>], iteration_bounds = array<i64: 2>, scalar_prefetch = 0 : i64, scratch_operands = 0 : i64, tpu.core_type = #tpu.core_type<tc>, window_params = [{transform_indices = @transform_0, window_bounds = array<i64: 1, 128, 128>}, {pipeline_mode = #tpu.pipeline_mode<synchronous>, transform_indices = @transform_1, window_bounds = array<i64: 2, 128, 128>}, {pipeline_mode = #tpu.pipeline_mode<synchronous>, transform_indices = @transform_2, window_bounds = array<i64: 3, 128, 128>}, {pipeline_mode = #tpu.pipeline_mode<synchronous>, transform_indices = @transform_3, window_bounds = array<i64: 3, 128, 128>}, {pipeline_mode = #tpu.pipeline_mode<synchronous>, transform_indices = @transform_4, window_bounds = array<i64: 3, 128, 128>}, {pipeline_mode = #tpu.pipeline_mode<synchronous>, transform_indices = @transform_5, window_bounds = array<i64: 6, 128>}, {transform_indices = @transform_6, window_bounds = array<i64: 1, 128, 128>}]} {
    %c0 = arith.constant 0 : index
    %c0_0 = arith.constant 0 : index
    %c0_1 = arith.constant 0 : index
    %0 = vector.load %arg1[%c0, %c0_0, %c0_1] : memref<1x128x128xf32, #tpu.memory_space<vmem>>, vector<1x128x128xf32>
    %1 = vector.shape_cast %0 : vector<1x128x128xf32> to vector<128x128xf32>
    %c0_2 = arith.constant 0 : index
    %c0_3 = arith.constant 0 : index
    %c0_4 = arith.constant 0 : index
    %2 = vector.load %arg2[%c0_2, %c0_3, %c0_4] : memref<2x128x128xf32, #tpu.memory_space<vmem>>, vector<1x128x128xf32>
    %3 = vector.shape_cast %2 : vector<1x128x128xf32> to vector<128x128xf32>
    %c1 = arith.constant 1 : index
    %c0_5 = arith.constant 0 : index
    %c0_6 = arith.constant 0 : index
    %4 = vector.load %arg2[%c1, %c0_5, %c0_6] : memref<2x128x128xf32, #tpu.memory_space<vmem>>, vector<1x128x128xf32>
    %5 = vector.shape_cast %4 : vector<1x128x128xf32> to vector<128x128xf32>
    %cst = arith.constant dense<0.000000e+00> : vector<128x128xf32>
    %6 = tpu.matmul %3, %1, %cst {dimension_numbers = #tpu.dot_dimension_numbers<[1], [0], [0], [1], [0, 0, 1, 1], [], []>} : vector<128x128xf32>, vector<128x128xf32>, vector<128x128xf32> -> vector<128x128xf32>
    %cst_7 = arith.constant dense<0.000000e+00> : vector<128x128xf32>
    %7 = tpu.matmul %5, %1, %cst_7 {dimension_numbers = #tpu.dot_dimension_numbers<[1], [0], [0], [1], [0, 0, 1, 1], [], []>} : vector<128x128xf32>, vector<128x128xf32>, vector<128x128xf32> -> vector<128x128xf32>
    %c0_8 = arith.constant 0 : index
    %c0_9 = arith.constant 0 : index
    %c0_10 = arith.constant 0 : index
    %8 = vector.load %arg3[%c0_8, %c0_9, %c0_10] : memref<3x128x128xf32, #tpu.memory_space<vmem>>, vector<1x128x128xf32>
    %9 = vector.shape_cast %8 : vector<1x128x128xf32> to vector<128x128xf32>
    %cst_11 = arith.constant dense<0.000000e+00> : vector<128x128xf32>
    %10 = tpu.matmul %6, %9, %cst_11 {dimension_numbers = #tpu.dot_dimension_numbers<[1], [0], [0], [1], [0, 0, 1, 1], [], []>} : vector<128x128xf32>, vector<128x128xf32>, vector<128x128xf32> -> vector<128x128xf32>
    %c1_12 = arith.constant 1 : index
    %c0_13 = arith.constant 0 : index
    %c0_14 = arith.constant 0 : index
    %11 = vector.load %arg3[%c1_12, %c0_13, %c0_14] : memref<3x128x128xf32, #tpu.memory_space<vmem>>, vector<1x128x128xf32>
    %12 = vector.shape_cast %11 : vector<1x128x128xf32> to vector<128x128xf32>
    %cst_15 = arith.constant dense<0.000000e+00> : vector<128x128xf32>
    %13 = tpu.matmul %1, %12, %cst_15 {dimension_numbers = #tpu.dot_dimension_numbers<[1], [0], [0], [1], [0, 0, 1, 1], [], []>} : vector<128x128xf32>, vector<128x128xf32>, vector<128x128xf32> -> vector<128x128xf32>
    %14 = arith.addf %10, %13 : vector<128x128xf32>
    %c2 = arith.constant 2 : index
    %c0_16 = arith.constant 0 : index
    %c0_17 = arith.constant 0 : index
    %15 = vector.load %arg3[%c2, %c0_16, %c0_17] : memref<3x128x128xf32, #tpu.memory_space<vmem>>, vector<1x128x128xf32>
    %16 = vector.shape_cast %15 : vector<1x128x128xf32> to vector<128x128xf32>
    %cst_18 = arith.constant dense<0.000000e+00> : vector<128x128xf32>
    %17 = tpu.matmul %7, %16, %cst_18 {dimension_numbers = #tpu.dot_dimension_numbers<[1], [0], [0], [1], [0, 0, 1, 1], [], []>} : vector<128x128xf32>, vector<128x128xf32>, vector<128x128xf32> -> vector<128x128xf32>
    %18 = arith.addf %14, %17 : vector<128x128xf32>
    %c0_19 = arith.constant 0 : index
    %c0_20 = arith.constant 0 : index
    %19 = vector.load %arg6[%c0_19, %c0_20] : memref<6x128xf32, #tpu.memory_space<vmem>>, vector<1x128xf32>
    %20 = vector.broadcast %19 : vector<1x128xf32> to vector<128x128xf32>
    %21 = arith.mulf %18, %20 : vector<128x128xf32>
    %c1_21 = arith.constant 1 : index
    %c0_22 = arith.constant 0 : index
    %22 = vector.load %arg6[%c1_21, %c0_22] : memref<6x128xf32, #tpu.memory_space<vmem>>, vector<1x128xf32>
    %23 = vector.broadcast %22 : vector<1x128xf32> to vector<128x128xf32>
    %24 = arith.addf %21, %23 : vector<128x128xf32>
    %cst_23 = arith.constant 0.000000e+00 : f32
    %25 = vector.broadcast %cst_23 : f32 to vector<128x128xf32>
    %26 = arith.maximumf %24, %25 : vector<128x128xf32>
    %cst_24 = arith.constant 0.000000e+00 : f32
    %27 = vector.broadcast %cst_24 : f32 to vector<16x128xf32>
    %28 = vector.extract_strided_slice %26 {offsets = [0, 0], sizes = [112, 128], strides = [1, 1]} : vector<128x128xf32> to vector<112x128xf32>
    %29 = tpu.concatenate %27, %28 in 0 : vector<16x128xf32>, vector<112x128xf32> -> vector<128x128xf32>
    %30 = vector.extract_strided_slice %26 {offsets = [16, 0], sizes = [112, 128], strides = [1, 1]} : vector<128x128xf32> to vector<112x128xf32>
    %31 = tpu.concatenate %30, %27 in 0 : vector<112x128xf32>, vector<16x128xf32> -> vector<128x128xf32>
    %c0_25 = arith.constant 0 : index
    %c0_26 = arith.constant 0 : index
    %c0_27 = arith.constant 0 : index
    %32 = vector.load %arg4[%c0_25, %c0_26, %c0_27] : memref<3x128x128xf32, #tpu.memory_space<vmem>>, vector<1x128x128xf32>
    %33 = vector.shape_cast %32 : vector<1x128x128xf32> to vector<128x128xf32>
    %cst_28 = arith.constant dense<0.000000e+00> : vector<128x128xf32>
    %34 = tpu.matmul %29, %33, %cst_28 {dimension_numbers = #tpu.dot_dimension_numbers<[1], [0], [0], [1], [0, 0, 1, 1], [], []>} : vector<128x128xf32>, vector<128x128xf32>, vector<128x128xf32> -> vector<128x128xf32>
    %c1_29 = arith.constant 1 : index
    %c0_30 = arith.constant 0 : index
    %c0_31 = arith.constant 0 : index
    %35 = vector.load %arg4[%c1_29, %c0_30, %c0_31] : memref<3x128x128xf32, #tpu.memory_space<vmem>>, vector<1x128x128xf32>
    %36 = vector.shape_cast %35 : vector<1x128x128xf32> to vector<128x128xf32>
    %cst_32 = arith.constant dense<0.000000e+00> : vector<128x128xf32>
    %37 = tpu.matmul %26, %36, %cst_32 {dimension_numbers = #tpu.dot_dimension_numbers<[1], [0], [0], [1], [0, 0, 1, 1], [], []>} : vector<128x128xf32>, vector<128x128xf32>, vector<128x128xf32> -> vector<128x128xf32>
    %38 = arith.addf %34, %37 : vector<128x128xf32>
    %c2_33 = arith.constant 2 : index
    %c0_34 = arith.constant 0 : index
    %c0_35 = arith.constant 0 : index
    %39 = vector.load %arg4[%c2_33, %c0_34, %c0_35] : memref<3x128x128xf32, #tpu.memory_space<vmem>>, vector<1x128x128xf32>
    %40 = vector.shape_cast %39 : vector<1x128x128xf32> to vector<128x128xf32>
    %cst_36 = arith.constant dense<0.000000e+00> : vector<128x128xf32>
    %41 = tpu.matmul %31, %40, %cst_36 {dimension_numbers = #tpu.dot_dimension_numbers<[1], [0], [0], [1], [0, 0, 1, 1], [], []>} : vector<128x128xf32>, vector<128x128xf32>, vector<128x128xf32> -> vector<128x128xf32>
    %42 = arith.addf %38, %41 : vector<128x128xf32>
    %c2_37 = arith.constant 2 : index
    %c0_38 = arith.constant 0 : index
    %43 = vector.load %arg6[%c2_37, %c0_38] : memref<6x128xf32, #tpu.memory_space<vmem>>, vector<1x128xf32>
    %44 = vector.broadcast %43 : vector<1x128xf32> to vector<128x128xf32>
    %45 = arith.mulf %42, %44 : vector<128x128xf32>
    %46 = arith.addf %26, %45 : vector<128x128xf32>
    %c3 = arith.constant 3 : index
    %c0_39 = arith.constant 0 : index
    %47 = vector.load %arg6[%c3, %c0_39] : memref<6x128xf32, #tpu.memory_space<vmem>>, vector<1x128xf32>
    %48 = vector.broadcast %47 : vector<1x128xf32> to vector<128x128xf32>
    %49 = arith.addf %46, %48 : vector<128x128xf32>
    %cst_40 = arith.constant 0.000000e+00 : f32
    %50 = vector.broadcast %cst_40 : f32 to vector<128x128xf32>
    %51 = arith.maximumf %49, %50 : vector<128x128xf32>
    %cst_41 = arith.constant dense<0.000000e+00> : vector<128x128xf32>
    %52 = tpu.matmul %3, %51, %cst_41 {dimension_numbers = #tpu.dot_dimension_numbers<[1], [0], [0], [1], [0, 0, 1, 1], [], []>} : vector<128x128xf32>, vector<128x128xf32>, vector<128x128xf32> -> vector<128x128xf32>
    %cst_42 = arith.constant dense<0.000000e+00> : vector<128x128xf32>
    %53 = tpu.matmul %5, %51, %cst_42 {dimension_numbers = #tpu.dot_dimension_numbers<[1], [0], [0], [1], [0, 0, 1, 1], [], []>} : vector<128x128xf32>, vector<128x128xf32>, vector<128x128xf32> -> vector<128x128xf32>
    %c0_43 = arith.constant 0 : index
    %c0_44 = arith.constant 0 : index
    %c0_45 = arith.constant 0 : index
    %54 = vector.load %arg5[%c0_43, %c0_44, %c0_45] : memref<3x128x128xf32, #tpu.memory_space<vmem>>, vector<1x128x128xf32>
    %55 = vector.shape_cast %54 : vector<1x128x128xf32> to vector<128x128xf32>
    %cst_46 = arith.constant dense<0.000000e+00> : vector<128x128xf32>
    %56 = tpu.matmul %52, %55, %cst_46 {dimension_numbers = #tpu.dot_dimension_numbers<[1], [0], [0], [1], [0, 0, 1, 1], [], []>} : vector<128x128xf32>, vector<128x128xf32>, vector<128x128xf32> -> vector<128x128xf32>
    %c1_47 = arith.constant 1 : index
    %c0_48 = arith.constant 0 : index
    %c0_49 = arith.constant 0 : index
    %57 = vector.load %arg5[%c1_47, %c0_48, %c0_49] : memref<3x128x128xf32, #tpu.memory_space<vmem>>, vector<1x128x128xf32>
    %58 = vector.shape_cast %57 : vector<1x128x128xf32> to vector<128x128xf32>
    %cst_50 = arith.constant dense<0.000000e+00> : vector<128x128xf32>
    %59 = tpu.matmul %51, %58, %cst_50 {dimension_numbers = #tpu.dot_dimension_numbers<[1], [0], [0], [1], [0, 0, 1, 1], [], []>} : vector<128x128xf32>, vector<128x128xf32>, vector<128x128xf32> -> vector<128x128xf32>
    %60 = arith.addf %56, %59 : vector<128x128xf32>
    %c2_51 = arith.constant 2 : index
    %c0_52 = arith.constant 0 : index
    %c0_53 = arith.constant 0 : index
    %61 = vector.load %arg5[%c2_51, %c0_52, %c0_53] : memref<3x128x128xf32, #tpu.memory_space<vmem>>, vector<1x128x128xf32>
    %62 = vector.shape_cast %61 : vector<1x128x128xf32> to vector<128x128xf32>
    %cst_54 = arith.constant dense<0.000000e+00> : vector<128x128xf32>
    %63 = tpu.matmul %53, %62, %cst_54 {dimension_numbers = #tpu.dot_dimension_numbers<[1], [0], [0], [1], [0, 0, 1, 1], [], []>} : vector<128x128xf32>, vector<128x128xf32>, vector<128x128xf32> -> vector<128x128xf32>
    %64 = arith.addf %60, %63 : vector<128x128xf32>
    %c4 = arith.constant 4 : index
    %c0_55 = arith.constant 0 : index
    %65 = vector.load %arg6[%c4, %c0_55] : memref<6x128xf32, #tpu.memory_space<vmem>>, vector<1x128xf32>
    %66 = vector.broadcast %65 : vector<1x128xf32> to vector<128x128xf32>
    %67 = arith.mulf %64, %66 : vector<128x128xf32>
    %c5 = arith.constant 5 : index
    %c0_56 = arith.constant 0 : index
    %68 = vector.load %arg6[%c5, %c0_56] : memref<6x128xf32, #tpu.memory_space<vmem>>, vector<1x128xf32>
    %69 = vector.broadcast %68 : vector<1x128xf32> to vector<128x128xf32>
    %70 = arith.addf %67, %69 : vector<128x128xf32>
    %71 = arith.addf %70, %1 : vector<128x128xf32>
    %cst_57 = arith.constant 0.000000e+00 : f32
    %72 = vector.broadcast %cst_57 : f32 to vector<128x128xf32>
    %73 = arith.maximumf %71, %72 : vector<128x128xf32>
    %c0_58 = arith.constant 0 : index
    %c0_59 = arith.constant 0 : index
    %c0_60 = arith.constant 0 : index
    %74 = vector.load %arg7[%c0_58, %c0_59, %c0_60] : memref<1x128x128xf32, #tpu.memory_space<vmem>>, vector<1x128x128xf32>
    %75 = vector.shape_cast %74 : vector<1x128x128xf32> to vector<128x128xf32>
    %76 = vector.shape_cast %73 : vector<128x128xf32> to vector<1x128x128xf32>
    tpu.vector_store %arg7[%c0_58, %c0_59, %c0_60], %76 {strides = array<i32>} : memref<1x128x128xf32, #tpu.memory_space<vmem>>, vector<1x128x128xf32>,
    return
  }
  func.func @transform_0(%arg0: i32) -> (i32, i32, i32) {
    %c0_i32 = arith.constant 0 : i32
    %c0_i32_0 = arith.constant 0 : i32
    %c0_i32_1 = arith.constant 0 : i32
    return %arg0, %c0_i32, %c0_i32_0 : i32, i32, i32
  }
  func.func @transform_1(%arg0: i32) -> (i32, i32, i32) {
    %c0_i32 = arith.constant 0 : i32
    %c0_i32_0 = arith.constant 0 : i32
    %c0_i32_1 = arith.constant 0 : i32
    %c0_i32_2 = arith.constant 0 : i32
    return %c0_i32, %c0_i32_0, %c0_i32_1 : i32, i32, i32
  }
  func.func @transform_2(%arg0: i32) -> (i32, i32, i32) {
    %c0_i32 = arith.constant 0 : i32
    %c0_i32_0 = arith.constant 0 : i32
    %c0_i32_1 = arith.constant 0 : i32
    %c0_i32_2 = arith.constant 0 : i32
    return %c0_i32, %c0_i32_0, %c0_i32_1 : i32, i32, i32
  }
  func.func @transform_3(%arg0: i32) -> (i32, i32, i32) {
    %c0_i32 = arith.constant 0 : i32
    %c0_i32_0 = arith.constant 0 : i32
    %c0_i32_1 = arith.constant 0 : i32
    %c0_i32_2 = arith.constant 0 : i32
    return %c0_i32, %c0_i32_0, %c0_i32_1 : i32, i32, i32
  }
  func.func @transform_4(%arg0: i32) -> (i32, i32, i32) {
    %c0_i32 = arith.constant 0 : i32
    %c0_i32_0 = arith.constant 0 : i32
    %c0_i32_1 = arith.constant 0 : i32
    %c0_i32_2 = arith.constant 0 : i32
    return %c0_i32, %c0_i32_0, %c0_i32_1 : i32, i32, i32
  }
  func.func @transform_5(%arg0: i32) -> (i32, i32) {
    %c0_i32 = arith.constant 0 : i32
    %c0_i32_0 = arith.constant 0 : i32
    %c0_i32_1 = arith.constant 0 : i32
    return %c0_i32, %c0_i32_0 : i32, i32
  }
  func.func @transform_6(%arg0: i32) -> (i32, i32, i32) {
    %c0_i32 = arith.constant 0 : i32
    %c0_i32_0 = arith.constant 0 : i32
    %c0_i32_1 = arith.constant 0 : i32
    return %arg0, %c0_i32, %c0_i32_0 : i32, i32, i32
  }
}

</mosaic_0001>

<bundles_post_ra>
// kernel: tile.33
= control target key start
LH: loop header
LB: loop body
LE: loop exit
PB: predicated region body
PF: predicated region fallthrough
CT: control target
= control target key end

     0   :  { %s28_s0 = inlined_call_operand.vmem [shape: f32[8], index: 0, kind: input, shape index: {}]   ;;  %s29_s1 = inlined_call_operand.vmem [shape: f32[16,8], index: 1, kind: output, shape index: {}]  }
   0x1   :  { %v4_v0 = vld [vmem:[%s28_s0] ss:$0 sm:$0xff] }
   0x2   :  { %5 = vst [vmem:[%s29_s1] sm:$0xff] %v4_v0 }
   0x3   :  { %8 = vst [vmem:[%s29_s1 + $0x8] sm:$0xff] %v4_v0 }

// kernel: tile.54
= control target key start
LH: loop header
LB: loop body
LE: loop exit
PB: predicated region body
PF: predicated region fallthrough
CT: control target
= control target key end

     0   :  { %s131_s10 = smov 120   ;;  %s132_s11 = smov 104   ;;  %vm3_vm0 = vcmask 64512   ;;  %vm9_vm1 = vcmask 1048512   ;;  %vm15_vm2 = vcmask 982912   ;;  %vm21_vm3 = vcmask 917312   ;;  %s207_s0 = inlined_call_operand.vmem [shape: f32[16,8], index: 0, kind: input, shape index: {}]   ;;  %s208_s1 = inlined_call_operand.vmem [shape: f32[1,128], index: 1, kind: output, shape index: {}]  }
   0x1   :  { %v101_v0 = vld [vmem:[%s207_s0 + $0xf] sm:$0x1]   ;;  %v103_v1 = vld [vmem:[%s207_s0 + $0xd] sm:$0x1]   ;;  %v105_v2 = vld [vmem:[%s207_s0 + $0xb] sm:$0x1]  }
   0x2   :  { %7 = vrot.lane.b32.xlu0 %v101_v0, %s131_s10  ;;  %19 = vrot.lane.b32.xlu1 %v103_v1, %s132_s11  ;;  %s133_s14 = smov 88   ;;  %v102_v3 = vld [vmem:[%s207_s0 + $0xe] sm:$0x1]   ;;  %v104_v4 = vld [vmem:[%s207_s0 + $0xc] sm:$0x1]   ;;  %s134_s19 = smov 112  }
   0x3   :  { %31 = vrot.lane.b32.xlu2 %v105_v2, %s133_s14  ;;  %s135_s20 = smov 96   ;;  %v106_v5 = vld [vmem:[%s207_s0 + $0xa] sm:$0x1]   ;;  %s136_s23 = smov 80   ;;  %v107_v6 = vld [vmem:[%s207_s0 + $0x9] sm:$0x1]  }
   0x4   :  { %v108_v7 = vld [vmem:[%s207_s0 + $0x8] sm:$0x1]   ;;  %s137_s28 = smov 72   ;;  %s138_s29 = smov 64   ;;  %v109_v8 = vld [vmem:[%s207_s0 + $0x7] sm:$0x1]  }
   0x5   :  { %s139_s3 = smov 56   ;;  %v110_v9 = vld [vmem:[%s207_s0 + $0x6] sm:$0x1]   ;;  %v111_v10 = vld [vmem:[%s207_s0 + $0x5] sm:$0x1]   ;;  %s140_s8 = smov 48  }
   0x6   :  { %s141_s9 = smov 40   ;;  %v112_v11 = vld [vmem:[%s207_s0 + $0x4] sm:$0x1]   ;;  %s142_s12 = smov 32   ;;  %v113_v12 = vld [vmem:[%s207_s0 + $0x3] sm:$0x1]  }
   0x7   :  { %v114_v13 = vld [vmem:[%s207_s0 + $0x2] sm:$0x1]   ;;  %s143_s17 = smov 24   ;;  %s144_s18 = smov 16   ;;  %v115_v14 = vld [vmem:[%s207_s0 + $0x1] sm:$0x1]  }
   0x8   :  { %s145_s21 = smov 8   ;;  %v2_v15 = vld [vmem:[%s207_s0] sm:$0x1]   ;;  %vm27_vm4 = vcmask 851712   ;;  %vm33_vm5 = vcmask 786112   ;;  %vm39_vm6 = vcmask 720512  }
   0x9   :  { %4 = vst.msk [vmem:[#allocation0] sm:$0x1] %vm3_vm0, %v2_v15   ;;  %vm45_vm7 = vcmask 654912   ;;  %vm51_vm8 = vcmask 589312   ;;  %vm57_vm9 = vcmask 523712   ;;  %vm63_vm10 = vcmask 458112  }
   0xa   :  { %13 = vrot.lane.b32.xlu0 %v102_v3, %s134_s19  ;;  %25 = vrot.lane.b32.xlu1 %v104_v4, %s135_s20  ;;  %vm69_vm11 = vcmask 392512   ;;  %vm75_vm12 = vcmask 326912   ;;  %vm81_vm13 = vcmask 261312   ;;  %vm87_vm14 = vcmask 195712  }
   0xb   :  { %37 = vrot.lane.b32.xlu2 %v106_v5, %s136_s23  ;;  %vm93_vm15 = vcmask 130112  }
  0x12   :  { %43 = vrot.lane.b32.xlu0 %v107_v6, %s137_s28  ;;  %49 = vrot.lane.b32.xlu1 %v108_v7, %s138_s29 }
  0x13   :  { %55 = vrot.lane.b32.xlu2 %v109_v8, %s139_s3 }
  0x1a   :  { %61 = vrot.lane.b32.xlu0 %v110_v9, %s140_s8  ;;  %67 = vrot.lane.b32.xlu1 %v111_v10, %s141_s9 }
  0x1b   :  { %73 = vrot.lane.b32.xlu2 %v112_v11, %s142_s12 }
  0x22   :  { %79 = vrot.lane.b32.xlu0 %v113_v12, %s143_s17  ;;  %85 = vrot.lane.b32.xlu1 %v114_v13, %s144_s18 }
  0x23   :  { %91 = vrot.lane.b32.xlu2 %v115_v14, %s145_s21 }
  0x5d   :  { %v32_v16 = vpop.permute.xlu2 %31  }
  0x65   :  { %v38_v17 = vpop.permute.xlu2 %37  }
  0x6d   :  { %v56_v18 = vpop.permute.xlu2 %55  }
  0x74   :  { %v8_v19 = vpop.permute.xlu0 %7   ;;  %v20_v20 = vpop.permute.xlu1 %19  }
  0x75   :  { %10 = vst.msk [vmem:[#allocation0] sm:$0x1] %vm9_vm1, %v8_v19   ;;  %v74_v21 = vpop.permute.xlu2 %73  }
  0x7c   :  { %v14_v22 = vpop.permute.xlu0 %13   ;;  %v26_v23 = vpop.permute.xlu1 %25  }
  0x7d   :  { %16 = vst.msk [vmem:[#allocation0] sm:$0x1] %vm15_vm2, %v14_v22   ;;  %v92_v24 = vpop.permute.xlu2 %91  }
  0x7e   :  { %22 = vst.msk [vmem:[#allocation0] sm:$0x1] %vm21_vm3, %v20_v20  }
  0x7f   :  { %28 = vst.msk [vmem:[#allocation0] sm:$0x1] %vm27_vm4, %v26_v23  }
  0x80   :  { %34 = vst.msk [vmem:[#allocation0] sm:$0x1] %vm33_vm5, %v32_v16  }
  0x81   :  { %40 = vst.msk [vmem:[#allocation0] sm:$0x1] %vm39_vm6, %v38_v17  }
  0x84   :  { %v44_v25 = vpop.permute.xlu0 %43   ;;  %v50_v26 = vpop.permute.xlu1 %49  }
  0x85   :  { %46 = vst.msk [vmem:[#allocation0] sm:$0x1] %vm45_vm7, %v44_v25  }
  0x86   :  { %52 = vst.msk [vmem:[#allocation0] sm:$0x1] %vm51_vm8, %v50_v26  }
  0x87   :  { %58 = vst.msk [vmem:[#allocation0] sm:$0x1] %vm57_vm9, %v56_v18  }
  0x8c   :  { %v62_v27 = vpop.permute.xlu0 %61   ;;  %v68_v28 = vpop.permute.xlu1 %67  }
  0x8d   :  { %64 = vst.msk [vmem:[#allocation0] sm:$0x1] %vm63_vm10, %v62_v27  }
  0x8e   :  { %70 = vst.msk [vmem:[#allocation0] sm:$0x1] %vm69_vm11, %v68_v28  }
  0x8f   :  { %76 = vst.msk [vmem:[#allocation0] sm:$0x1] %vm75_vm12, %v74_v21  }
  0x94   :  { %v80_v29 = vpop.permute.xlu0 %79   ;;  %v86_v30 = vpop.permute.xlu1 %85  }
  0x95   :  { %82 = vst.msk [vmem:[#allocation0] sm:$0x1] %vm81_vm13, %v80_v29  }
  0x96   :  { %88 = vst.msk [vmem:[#allocation0] sm:$0x1] %vm87_vm14, %v86_v30  }
  0x97   :  { %94 = vst.msk [vmem:[#allocation0] sm:$0x1] %vm93_vm15, %v92_v24  }
  0x9e   :  { %v97_v31 = vld [vmem:[#allocation0] sm:$0x1] }
  0x9f   :  { %100 = vst [vmem:[%s208_s1] sm:$0x1] %v97_v31 }

// kernel: basic_block_p3d.1
= control target key start
LH: loop header
LB: loop body
LE: loop exit
PB: predicated region body
PF: predicated region fallthrough
CT: control target
= control target key end

     0   :  { %s1883_s21 = smov 0   ;;  %s2983_s0 = inlined_call_operand.vmem [shape: f32[2,128,128], index: 0, kind: input, shape index: {}]   ;;  %s2984_s1 = inlined_call_operand.vmem [shape: f32[2,128,128], index: 1, kind: input, shape index: {}]   ;;  %s2985_s2 = inlined_call_operand.vmem [shape: f32[3,128,128], index: 2, kind: input, shape index: {}]   ;;  %s2986_s3 = inlined_call_operand.vmem [shape: f32[3,128,128], index: 3, kind: input, shape index: {}]   ;;  %s2987_s4 = inlined_call_operand.vmem [shape: f32[3,128,128], index: 4, kind: input, shape index: {}]   ;;  %s2988_s5 = inlined_call_operand.vmem [shape: f32[6,128], index: 5, kind: input, shape index: {}]   ;;  %s2989_s6 = inlined_call_operand.vmem [shape: f32[2,128,128], index: 6, kind: output, shape index: {}]  }
   0x1 LB: > { %s1603_s22 = sadd.s32 4294967295, %s1845_s21   ;;  %p1607_p0 = scmp.ge.s32.totalorder %s1845_s21, 1  ;;  %s1845_s21 = sphi %s1883_s21, %s16_s21  }
   0x2   : > { %p212_p1 = scmp.lt.s32.totalorder %s1845_s21, 3 }
   0x4   : > { %p213_p2 = pnand %p1607_p0, %p212_p1 }
   0x5   : > { %p242_p3 = scmp.lt.s32.totalorder (!%p213_p2), %s1603_s22, 1 }
   0x6   : > { %216 = sbr.rel (%p213_p2) target bundleno = 1039 (0x40f), region = 44 }
   0xb   : > { %s2991_s22 = smov (!%p242_p3, %s1603_s22), 1  ;;  %v268_v16 = vld [vmem:[%s2984_s1] sm:$0xff]  ;;  %v269_v18 = vld [vmem:[%s2984_s1 + $0x8] sm:$0xff]  ;;  %v270_v20 = vld [vmem:[%s2984_s1 + $0x10] sm:$0xff] }
   0xc   : > { %s1726_s23 = sshll.u32 %s2991_s22, 7  ;;  %v272_v17 = vld [vmem:[%s2984_s1 + $0x20] sm:$0xff]  ;;  %v273_v19 = vld [vmem:[%s2984_s1 + $0x28] sm:$0xff]  ;;  %v274_v21 = vld [vmem:[%s2984_s1 + $0x30] sm:$0xff] }
   0xd   : > { %s1899_s26 = scalar_lea.vmem %s2983_s0, %s1726_s23  ;;  %v271_v22 = vld [vmem:[%s2984_s1 + $0x18] sm:$0xff]  ;;  %v1612_v24 = vld [vmem:[%s2984_s1 + $0x80] sm:$0xff]  ;;  %v1613_v25 = vld [vmem:[%s2984_s1 + $0x88] sm:$0xff]  ;;  %s2917_s13 = scalar_lea.vmem %s2989_s6, %s1726_s23 }
   0xe   : > { %v1902_v0 = vld [vmem:[%s1899_s26 + $0x78] sm:$0xff]  ;;  %v1905_v1 = vld [vmem:[%s1899_s26 + $0x70] sm:$0xff]  ;;  %v1910_v2 = vld [vmem:[%s1899_s26 + $0x68] sm:$0xff] }
   0xf   : > { %301 = vmatpush.msra.mxu0 %v1902_v0  ;;  %1728 = vmatpush.msra.mxu1 %v1902_v0  ;;  %v1917_v3 = vld [vmem:[%s1899_s26 + $0x60] sm:$0xff]  ;;  %v1924_v4 = vld [vmem:[%s1899_s26 + $0x58] sm:$0xff]  ;;  %v1931_v5 = vld [vmem:[%s1899_s26 + $0x50] sm:$0xff] }
  0x10   : > { %1729 = vmatpush.msra.mxu2 %v1902_v0  ;;  %1730 = vmatpush.msra.mxu3 %v1902_v0  ;;  %v1938_v6 = vld [vmem:[%s1899_s26 + $0x48] sm:$0xff]  ;;  %v1945_v7 = vld [vmem:[%s1899_s26 + $0x40] sm:$0xff]  ;;  %v1952_v8 = vld [vmem:[%s1899_s26 + $0x38] sm:$0xff] }
  0x11   : > { %302 = vmatpush.msra.mxu0 %v1905_v1  ;;  %1731 = vmatpush.msra.mxu1 %v1905_v1  ;;  %v1959_v9 = vld [vmem:[%s1899_s26 + $0x30] sm:$0xff]  ;;  %v1966_v10 = vld [vmem:[%s1899_s26 + $0x28] sm:$0xff]  ;;  %v1973_v11 = vld [vmem:[%s1899_s26 + $0x20] sm:$0xff] }
  0x12   : > { %1732 = vmatpush.msra.mxu2 %v1905_v1  ;;  %1733 = vmatpush.msra.mxu3 %v1905_v1  ;;  %v1980_v12 = vld [vmem:[%s1899_s26 + $0x18] sm:$0xff]  ;;  %v1987_v13 = vld [vmem:[%s1899_s26 + $0x10] sm:$0xff]  ;;  %v1994_v14 = vld [vmem:[%s1899_s26 + $0x8] sm:$0xff] }
  0x13   : > { %303 = vmatpush.msra.mxu0 %v1910_v2  ;;  %1734 = vmatpush.msra.mxu1 %v1910_v2  ;;  %v2001_v15 = vld [vmem:[%s1899_s26] sm:$0xff]  ;;  %v275_v23 = vld [vmem:[%s2984_s1 + $0x38] sm:$0xff]  ;;  %v1614_v26 = vld [vmem:[%s2984_s1 + $0x90] sm:$0xff] }
  0x14   : > { %1735 = vmatpush.msra.mxu2 %v1910_v2  ;;  %1736 = vmatpush.msra.mxu3 %v1910_v2  ;;  %v276_v27 = vld [vmem:[%s2984_s1 + $0x40] sm:$0xff]  ;;  %v1615_v28 = vld [vmem:[%s2984_s1 + $0x98] sm:$0xff]  ;;  %v277_v29 = vld [vmem:[%s2984_s1 + $0x48] sm:$0xff] }
  0x15   : > { %304 = vmatpush.msra.mxu0 %v1917_v3  ;;  %1737 = vmatpush.msra.mxu1 %v1917_v3  ;;  %v280_v30 = vld [vmem:[%s2984_s1 + $0x60] sm:$0xff]  ;;  %v1643_v31 = vld [vmem:[%s2985_s2 + $0xf8] sm:$0xff]  ;;  %v1642_v34 = vld [vmem:[%s2985_s2 + $0xf0] sm:$0xff] }
  0x16   : > { %1738 = vmatpush.msra.mxu2 %v1917_v3  ;;  %1739 = vmatpush.msra.mxu3 %v1917_v3  ;;  %v446_v32 = vld [vmem:[%s2985_s2 + $0x78] sm:$0xff]  ;;  %v1616_v33 = vld [vmem:[%s2984_s1 + $0xa0] sm:$0xff]  ;;  %v445_v35 = vld [vmem:[%s2985_s2 + $0x70] sm:$0xff] }
  0x17   : > { %305 = vmatpush.msra.mxu0 %v1924_v4  ;;  %1740 = vmatpush.msra.mxu1 %v1924_v4  ;;  %v278_v36 = vld [vmem:[%s2984_s1 + $0x50] sm:$0xff]  ;;  %v1641_v37 = vld [vmem:[%s2985_s2 + $0xe8] sm:$0xff]  ;;  %v1640_v39 = vld [vmem:[%s2985_s2 + $0xe0] sm:$0xff] }
  0x18   : > { %1741 = vmatpush.msra.mxu2 %v1924_v4  ;;  %1742 = vmatpush.msra.mxu3 %v1924_v4  ;;  %v444_v38 = vld [vmem:[%s2985_s2 + $0x68] sm:$0xff]  ;;  %v443_v40 = vld [vmem:[%s2985_s2 + $0x60] sm:$0xff]  ;;  %v1639_v42 = vld [vmem:[%s2985_s2 + $0xd8] sm:$0xff] }
  0x19   : > { %306 = vmatpush.msra.mxu0 %v1931_v5  ;;  %1743 = vmatpush.msra.mxu1 %v1931_v5  ;;  %v281_v41 = vld [vmem:[%s2984_s1 + $0x68] sm:$0xff]  ;;  %v442_v43 = vld [vmem:[%s2985_s2 + $0x58] sm:$0xff]  ;;  %v1638_v45 = vld [vmem:[%s2985_s2 + $0xd0] sm:$0xff] }
  0x1a   : > { %1744 = vmatpush.msra.mxu2 %v1931_v5  ;;  %1745 = vmatpush.msra.mxu3 %v1931_v5  ;;  %v1617_v44 = vld [vmem:[%s2984_s1 + $0xa8] sm:$0xff]  ;;  %v441_v46 = vld [vmem:[%s2985_s2 + $0x50] sm:$0xff]  ;;  %v279_v47 = vld [vmem:[%s2984_s1 + $0x58] sm:$0xff] }
  0x1b   : > { %307 = vmatpush.msra.mxu0 %v1938_v6  ;;  %1746 = vmatpush.msra.mxu1 %v1938_v6  ;;  %v1637_v48 = vld [vmem:[%s2985_s2 + $0xc8] sm:$0xff]  ;;  %v1636_v50 = vld [vmem:[%s2985_s2 + $0xc0] sm:$0xff]  ;;  %v282_v52 = vld [vmem:[%s2984_s1 + $0x70] sm:$0xff] }
  0x1c   : > { %1747 = vmatpush.msra.mxu2 %v1938_v6  ;;  %1748 = vmatpush.msra.mxu3 %v1938_v6  ;;  %v440_v49 = vld [vmem:[%s2985_s2 + $0x48] sm:$0xff]  ;;  %v439_v51 = vld [vmem:[%s2985_s2 + $0x40] sm:$0xff]  ;;  %v1635_v53 = vld [vmem:[%s2985_s2 + $0xb8] sm:$0xff] }
  0x1d   : > { %308 = vmatpush.msra.mxu0 %v1945_v7  ;;  %1749 = vmatpush.msra.mxu1 %v1945_v7  ;;  %v438_v54 = vld [vmem:[%s2985_s2 + $0x38] sm:$0xff]  ;;  %v1618_v55 = vld [vmem:[%s2984_s1 + $0xb0] sm:$0xff]  ;;  %v1633_v58 = vld [vmem:[%s2985_s2 + $0xa8] sm:$0xff] }
  0x1e   : > { %1750 = vmatpush.msra.mxu2 %v1945_v7  ;;  %1751 = vmatpush.msra.mxu3 %v1945_v7  ;;  %v1634_v56 = vld [vmem:[%s2985_s2 + $0xb0] sm:$0xff]  ;;  %v436_v59 = vld [vmem:[%s2985_s2 + $0x28] sm:$0xff]  ;;  %v1632_v60 = vld [vmem:[%s2985_s2 + $0xa0] sm:$0xff] }
  0x1f   : > { %309 = vmatpush.msra.mxu0 %v1952_v8  ;;  %1752 = vmatpush.msra.mxu1 %v1952_v8  ;;  %v437_v57 = vld [vmem:[%s2985_s2 + $0x30] sm:$0xff]  ;;  %v435_v61 = vld [vmem:[%s2985_s2 + $0x20] sm:$0xff]  ;;  %v283_v62 = vld [vmem:[%s2984_s1 + $0x78] sm:$0xff] }
  0x20   : > { %1753 = vmatpush.msra.mxu2 %v1952_v8  ;;  %1754 = vmatpush.msra.mxu3 %v1952_v8  ;;  %v1631_v63 = vld [vmem:[%s2985_s2 + $0x98] sm:$0xff] }
  0x21   : > { %310 = vmatpush.msra.mxu0 %v1959_v9  ;;  %1755 = vmatpush.msra.mxu1 %v1959_v9 }
  0x22   : > { %1756 = vmatpush.msra.mxu2 %v1959_v9  ;;  %1757 = vmatpush.msra.mxu3 %v1959_v9 }
  0x23   : > { %311 = vmatpush.msra.mxu0 %v1966_v10  ;;  %1758 = vmatpush.msra.mxu1 %v1966_v10 }
  0x24   : > { %1759 = vmatpush.msra.mxu2 %v1966_v10  ;;  %1760 = vmatpush.msra.mxu3 %v1966_v10 }
  0x25   : > { %312 = vmatpush.msra.mxu0 %v1973_v11  ;;  %1761 = vmatpush.msra.mxu1 %v1973_v11 }
  0x26   : > { %1762 = vmatpush.msra.mxu2 %v1973_v11  ;;  %1763 = vmatpush.msra.mxu3 %v1973_v11 }
  0x27   : > { %313 = vmatpush.msra.mxu0 %v1980_v12  ;;  %1764 = vmatpush.msra.mxu1 %v1980_v12 }
  0x28   : > { %1765 = vmatpush.msra.mxu2 %v1980_v12  ;;  %1766 = vmatpush.msra.mxu3 %v1980_v12 }
  0x29   : > { %314 = vmatpush.msra.mxu0 %v1987_v13  ;;  %1767 = vmatpush.msra.mxu1 %v1987_v13 }
  0x2a   : > { %1768 = vmatpush.msra.mxu2 %v1987_v13  ;;  %1769 = vmatpush.msra.mxu3 %v1987_v13 }
  0x2b   : > { %315 = vmatpush.msra.mxu0 %v1994_v14  ;;  %1770 = vmatpush.msra.mxu1 %v1994_v14 }
  0x2c   : > { %1771 = vmatpush.msra.mxu2 %v1994_v14  ;;  %1772 = vmatpush.msra.mxu3 %v1994_v14 }
  0x2d   : > { %316 = vmatpush.msra.mxu0 %v2001_v15  ;;  %1773 = vmatpush.msra.mxu1 %v2001_v15 }
  0x2e   : > { %317 = vmatmul.f32.vlgmr.msra.gmra.mxu0 %v268_v16  ;;  %329 = vmatmul.f32.vlgmr.msra.gmra.mxu1 %v272_v17  ;;  %v434_v16 = vld [vmem:[%s2985_s2 + $0x18] sm:$0xff] }
  0x2f   : > { %366 = vmatpush.msrb.mxu1 %v1902_v0  ;;  %1774 = vmatpush.msra.mxu2 %v2001_v15  ;;  %v1619_v17 = vld [vmem:[%s2984_s1 + $0xb8] sm:$0xff] }
  0x30   : > { %1775 = vmatpush.msra.mxu3 %v2001_v15  ;;  %341 = vmatmul.f32.vlgmr.msra.gmra.mxu2 %v276_v27  ;;  %v1657_v27 = vld [vmem:[%s2985_s2 + $0x168] sm:$0xff] }
  0x31   : > { %367 = vmatpush.msrb.mxu1 %v1905_v1  ;;  %353 = vmatmul.f32.vlgmr.msra.gmra.mxu3 %v280_v30  ;;  %v1654_v30 = vld [vmem:[%s2985_s2 + $0x150] sm:$0xff] }
  0x32   : > { %464 = vmatpush.msrb.mxu2 %v1643_v31  ;;  %529 = vmatpush.msrb.mxu3 %v446_v32  ;;  %v1653_v31 = vld [vmem:[%s2985_s2 + $0x148] sm:$0xff]  ;;  %v1622_v32 = vld [vmem:[%s2984_s1 + $0xd0] sm:$0xff] }
  0x33   : > { %368 = vmatpush.msrb.mxu1 %v1910_v2 }
  0x34   : > { %465 = vmatpush.msrb.mxu2 %v1642_v34  ;;  %530 = vmatpush.msrb.mxu3 %v445_v35  ;;  %v1650_v34 = vld [vmem:[%s2985_s2 + $0x130] sm:$0xff]  ;;  %v1649_v35 = vld [vmem:[%s2985_s2 + $0x128] sm:$0xff] }
  0x35   : > { %369 = vmatpush.msrb.mxu1 %v1917_v3 }
  0x36   : > { %320 = vmatmul.f32.gmra.mxu0 %v269_v18  ;;  %332 = vmatmul.f32.gmra.mxu1 %v273_v19  ;;  %v1630_v18 = vld [vmem:[%s2985_s2 + $0x90] sm:$0xff] }
  0x37   : > { %370 = vmatpush.msrb.mxu1 %v1924_v4  ;;  %466 = vmatpush.msrb.mxu2 %v1641_v37  ;;  %v433_v19 = vld [vmem:[%s2985_s2 + $0x10] sm:$0xff]  ;;  %v1647_v37 = vld [vmem:[%s2985_s2 + $0x118] sm:$0xff] }
  0x38   : > { %344 = vmatmul.f32.gmra.mxu2 %v277_v29  ;;  %531 = vmatpush.msrb.mxu3 %v444_v38  ;;  %v1655_v29 = vld [vmem:[%s2985_s2 + $0x158] sm:$0xff]  ;;  %v1646_v38 = vld [vmem:[%s2985_s2 + $0x110] sm:$0xff] }
  0x39   : > { %371 = vmatpush.msrb.mxu1 %v1931_v5  ;;  %356 = vmatmul.f32.gmra.mxu3 %v281_v41 }
  0x3a   : > { %467 = vmatpush.msrb.mxu2 %v1640_v39  ;;  %532 = vmatpush.msrb.mxu3 %v443_v40  ;;  %v1645_v39 = vld [vmem:[%s2985_s2 + $0x108] sm:$0xff] }
  0x3b   : > { %372 = vmatpush.msrb.mxu1 %v1938_v6 }
  0x3c   : > { %468 = vmatpush.msrb.mxu2 %v1639_v42  ;;  %533 = vmatpush.msrb.mxu3 %v442_v43  ;;  %v1624_v42 = vld [vmem:[%s2984_s1 + $0xe0] sm:$0xff] }
  0x3d   : > { %373 = vmatpush.msrb.mxu1 %v1945_v7 }
  0x3e   : > { %323 = vmatmul.f32.gmra.mxu0 %v270_v20  ;;  %335 = vmatmul.f32.gmra.mxu1 %v274_v21  ;;  %v1629_v20 = vld [vmem:[%s2985_s2 + $0x88] sm:$0xff] }
  0x3f   : > { %374 = vmatpush.msrb.mxu1 %v1952_v8  ;;  %469 = vmatpush.msrb.mxu2 %v1638_v45  ;;  %v432_v21 = vld [vmem:[%s2985_s2 + $0x8] sm:$0xff] }
  0x40   : > { %347 = vmatmul.f32.gmra.mxu2 %v278_v36  ;;  %534 = vmatpush.msrb.mxu3 %v441_v46  ;;  %v1623_v36 = vld [vmem:[%s2984_s1 + $0xd8] sm:$0xff]  ;;  %v1625_v45 = vld [vmem:[%s2984_s1 + $0xe8] sm:$0xff] }
  0x41   : > { %375 = vmatpush.msrb.mxu1 %v1959_v9  ;;  %470 = vmatpush.msrb.mxu2 %v1637_v48  ;;  %v1626_v48 = vld [vmem:[%s2984_s1 + $0xf0] sm:$0xff] }
  0x42   : > { %535 = vmatpush.msrb.mxu3 %v440_v49 }
  0x43   : > { %376 = vmatpush.msrb.mxu1 %v1966_v10  ;;  %359 = vmatmul.f32.gmra.mxu3 %v282_v52 }
  0x44   : > { %471 = vmatpush.msrb.mxu2 %v1636_v50  ;;  %536 = vmatpush.msrb.mxu3 %v439_v51  ;;  %v1627_v50 = vld [vmem:[%s2984_s1 + $0xf8] sm:$0xff] }
  0x45   : > { %377 = vmatpush.msrb.mxu1 %v1973_v11 }
  0x46   : > { %326 = vmatmul.f32.gmra.mxu0 %v271_v22  ;;  %338 = vmatmul.f32.gmra.mxu1 %v275_v23  ;;  %v1628_v22 = vld [vmem:[%s2985_s2 + $0x80] sm:$0xff] }
  0x47   : > { %378 = vmatpush.msrb.mxu1 %v1980_v12  ;;  %472 = vmatpush.msrb.mxu2 %v1635_v53  ;;  %v431_v23 = vld [vmem:[%s2985_s2] sm:$0xff] }
  0x48   : > { %350 = vmatmul.f32.gmra.mxu2 %v279_v47  ;;  %537 = vmatpush.msrb.mxu3 %v438_v54 }
  0x49   : > { %379 = vmatpush.msrb.mxu1 %v1987_v13  ;;  %473 = vmatpush.msrb.mxu2 %v1634_v56 }
  0x4a   : > { %538 = vmatpush.msrb.mxu3 %v437_v57 }
  0x4b   : > { %380 = vmatpush.msrb.mxu1 %v1994_v14  ;;  %474 = vmatpush.msrb.mxu2 %v1633_v58  ;;  %v755_v58 = vld [vmem:[%s2986_s3 + $0x58] sm:$0xff] }
  0x4c   : > { %539 = vmatpush.msrb.mxu3 %v436_v59 }
  0x4d   : > { %381 = vmatpush.msrb.mxu1 %v2001_v15  ;;  %362 = vmatmul.f32.gmra.mxu3 %v283_v62  ;;  %v752_v62 = vld [vmem:[%s2986_s3 + $0x40] sm:$0xff] }
  0x4e   : > { %382 = vmatmul.f32.vlgmr.msrb.gmra.mxu1 %v1612_v24  ;;  %475 = vmatpush.msrb.mxu2 %v1632_v60  ;;  %v1620_v24 = vld [vmem:[%s2984_s1 + $0xc0] sm:$0xff]  ;;  %v754_v60 = vld [vmem:[%s2986_s3 + $0x50] sm:$0xff] }
  0x4f   : > { %540 = vmatpush.msrb.mxu3 %v435_v61  ;;  %v753_v61 = vld [vmem:[%s2986_s3 + $0x48] sm:$0xff] }
  0x50   : > { %476 = vmatpush.msrb.mxu2 %v1631_v63  ;;  %v1675_v63 = vld [vmem:[%s2986_s3 + $0xf8] sm:$0xff] }
  0x51   : > { %541 = vmatpush.msrb.mxu3 %v434_v16  ;;  %v751_v16 = vld [vmem:[%s2986_s3 + $0x38] sm:$0xff]  ;;  %777 = vmatpush.msra.mxu1 %v1675_v63 }
  0x52   : > { %477 = vmatpush.msrb.mxu2 %v1630_v18  ;;  %v1674_v18 = vld [vmem:[%s2986_s3 + $0xf0] sm:$0xff] }
  0x53   : > { %542 = vmatpush.msrb.mxu3 %v433_v19  ;;  %v750_v19 = vld [vmem:[%s2986_s3 + $0x30] sm:$0xff]  ;;  %778 = vmatpush.msra.mxu1 %v1674_v18 }
  0x54   : > { %478 = vmatpush.msrb.mxu2 %v1629_v20  ;;  %v1673_v20 = vld [vmem:[%s2986_s3 + $0xe8] sm:$0xff] }
  0x55   : > { %543 = vmatpush.msrb.mxu3 %v432_v21  ;;  %v749_v21 = vld [vmem:[%s2986_s3 + $0x28] sm:$0xff]  ;;  %779 = vmatpush.msra.mxu1 %v1673_v20 }
  0x56   : > { %385 = vmatmul.f32.gmra.mxu1 %v1613_v25  ;;  %479 = vmatpush.msrb.mxu2 %v1628_v22  ;;  %v1659_v25 = vld [vmem:[%s2985_s2 + $0x178] sm:$0xff]  ;;  %v1672_v22 = vld [vmem:[%s2986_s3 + $0xe0] sm:$0xff] }
  0x57   : > { %544 = vmatpush.msrb.mxu3 %v431_v23  ;;  %480 = vmatmul.f32.vlgmr.msrb.gmra.mxu2 %v2001_v15  ;;  %v1656_v15 = vld [vmem:[%s2985_s2 + $0x160] sm:$0xff] }
  0x58   : > { %611 = vmatpush.msrb.mxu0 %v1659_v25  ;;  %v748_v23 = vld [vmem:[%s2986_s3 + $0x20] sm:$0xff]  ;;  %780 = vmatpush.msra.mxu1 %v1672_v22  ;;  %v1671_v25 = vld [vmem:[%s2986_s3 + $0xd8] sm:$0xff] }
  0x5a   : > { %781 = vmatpush.msra.mxu1 %v1671_v25 }
  0x5e   : > { %388 = vmatmul.f32.gmra.mxu1 %v1614_v26  ;;  %v1658_v26 = vld [vmem:[%s2985_s2 + $0x170] sm:$0xff] }
  0x5f   : > { %612 = vmatpush.msrb.mxu0 %v1658_v26  ;;  %483 = vmatmul.f32.gmra.mxu2 %v1994_v14  ;;  %v1652_v14 = vld [vmem:[%s2985_s2 + $0x140] sm:$0xff]  ;;  %v747_v26 = vld [vmem:[%s2986_s3 + $0x18] sm:$0xff] }
  0x61   : > { %613 = vmatpush.msrb.mxu0 %v1657_v27 }
  0x63   : > { %614 = vmatpush.msrb.mxu0 %v1656_v15  ;;  %v1670_v15 = vld [vmem:[%s2986_s3 + $0xd0] sm:$0xff] }
  0x64   : > { %782 = vmatpush.msra.mxu1 %v1670_v15 }
  0x65   : > { %615 = vmatpush.msrb.mxu0 %v1655_v29  ;;  %v1669_v29 = vld [vmem:[%s2986_s3 + $0xc8] sm:$0xff] }
  0x66   : > { %391 = vmatmul.f32.gmra.mxu1 %v1615_v28  ;;  %v1621_v28 = vld [vmem:[%s2984_s1 + $0xc8] sm:$0xff] }
  0x67   : > { %616 = vmatpush.msrb.mxu0 %v1654_v30  ;;  %486 = vmatmul.f32.gmra.mxu2 %v1987_v13  ;;  %v1648_v13 = vld [vmem:[%s2985_s2 + $0x120] sm:$0xff]  ;;  %v745_v30 = vld [vmem:[%s2986_s3 + $0x8] sm:$0xff] }
  0x68   : > { %783 = vmatpush.msra.mxu1 %v1669_v29 }
  0x69   : > { %617 = vmatpush.msrb.mxu0 %v1653_v31  ;;  %v1668_v31 = vld [vmem:[%s2986_s3 + $0xc0] sm:$0xff] }
  0x6a   : > { %784 = vmatpush.msra.mxu1 %v1668_v31 }
  0x6b   : > { %618 = vmatpush.msrb.mxu0 %v1652_v14  ;;  %v744_v14 = vld [vmem:[%s2986_s3] sm:$0xff] }
  0x6e   : > { %394 = vmatmul.f32.gmra.mxu1 %v1616_v33  ;;  %v1651_v33 = vld [vmem:[%s2985_s2 + $0x138] sm:$0xff] }
  0x6f   : > { %619 = vmatpush.msrb.mxu0 %v1651_v33  ;;  %489 = vmatmul.f32.gmra.mxu2 %v1980_v12  ;;  %v1644_v12 = vld [vmem:[%s2985_s2 + $0x100] sm:$0xff]  ;;  %v1667_v33 = vld [vmem:[%s2986_s3 + $0xb8] sm:$0xff] }
  0x70   : > { %785 = vmatpush.msra.mxu1 %v1667_v33 }
  0x71   : > { %620 = vmatpush.msrb.mxu0 %v1650_v34  ;;  %v1691_v34 = vld [vmem:[%s2986_s3 + $0x178] sm:$0xff] }
  0x72   : > { %924 = vmatpush.msra.mxu3 %v1691_v34 }
  0x73   : > { %621 = vmatpush.msrb.mxu0 %v1649_v35 }
  0x75   : > { %622 = vmatpush.msrb.mxu0 %v1648_v13 }
  0x76   : > { %397 = vmatmul.f32.gmra.mxu1 %v1617_v44 }
  0x77   : > { %623 = vmatpush.msrb.mxu0 %v1647_v37  ;;  %492 = vmatmul.f32.gmra.mxu2 %v1973_v11  ;;  %v1690_v37 = vld [vmem:[%s2986_s3 + $0x170] sm:$0xff] }
  0x78   : > { %925 = vmatpush.msra.mxu3 %v1690_v37 }
  0x79   : > { %624 = vmatpush.msrb.mxu0 %v1646_v38  ;;  %v1665_v38 = vld [vmem:[%s2986_s3 + $0xa8] sm:$0xff] }
  0x7b   : > { %625 = vmatpush.msrb.mxu0 %v1645_v39  ;;  %v1689_v39 = vld [vmem:[%s2986_s3 + $0x168] sm:$0xff] }
  0x7c   : > { %926 = vmatpush.msra.mxu3 %v1689_v39 }
  0x7d   : > { %626 = vmatpush.msrb.mxu0 %v1644_v12 }
  0x7e   : > { %400 = vmatmul.f32.gmra.mxu1 %v1618_v55 }
  0x7f   : > { %495 = vmatmul.f32.gmra.mxu2 %v1966_v10 }
  0x86   : > { %403 = vmatmul.f32.gmra.mxu1 %v1619_v17 }
  0x87   : > { %498 = vmatmul.f32.gmra.mxu2 %v1959_v9 }
  0x8e   : > { %406 = vmatmul.f32.gmra.mxu1 %v1620_v24 }
  0x8f   : > { %501 = vmatmul.f32.gmra.mxu2 %v1952_v8 }
  0x96   : > { %409 = vmatmul.f32.gmra.mxu1 %v1621_v28  ;;  %v746_v28 = vld [vmem:[%s2986_s3 + $0x10] sm:$0xff] }
  0x97   : > { %504 = vmatmul.f32.gmra.mxu2 %v1945_v7 }
  0x9e   : > { %412 = vmatmul.f32.gmra.mxu1 %v1622_v32  ;;  %v1847_v32 = vmov 0.0  }
  0x9f   : > { %507 = vmatmul.f32.gmra.mxu2 %v1938_v6 }
  0xa6   : > { %415 = vmatmul.f32.gmra.mxu1 %v1623_v36  ;;  %v1666_v36 = vld [vmem:[%s2986_s3 + $0xb0] sm:$0xff] }
  0xa7   : > { %510 = vmatmul.f32.gmra.mxu2 %v1931_v5  ;;  %786 = vmatpush.msra.mxu1 %v1666_v36 }
  0xa9   : > { %787 = vmatpush.msra.mxu1 %v1665_v38 }
  0xab   : > { %v318_v40 = vpop.f32.mrf.mxu0  ;;  %v330_v41 = vpop.f32.mrf.mxu1 }
  0xac   : > { %545 = vmatmul.f32.vlgmr.msrb.gmra.mxu3 %v318_v40  ;;  %v1664_v40 = vld [vmem:[%s2986_s3 + $0xa0] sm:$0xff] }
  0xad   : > { %788 = vmatpush.msra.mxu1 %v1664_v40 }
  0xae   : > { %418 = vmatmul.f32.gmra.mxu1 %v1624_v42  ;;  %v1663_v42 = vld [vmem:[%s2986_s3 + $0x98] sm:$0xff] }
  0xaf   : > { %513 = vmatmul.f32.gmra.mxu2 %v1924_v4  ;;  %v759_v4 = vld [vmem:[%s2986_s3 + $0x78] sm:$0xff]  ;;  %789 = vmatpush.msra.mxu1 %v1663_v42 }
  0xb0   : > { %842 = vmatpush.msra.mxu2 %v759_v4  ;;  %v1677_v4 = vld [vmem:[%s2986_s3 + $0x108] sm:$0xff] }
  0xb3   : > { %v321_v43 = vpop.f32.mrf.mxu0  ;;  %v333_v44 = vpop.f32.mrf.mxu1 }
  0xb4   : > { %548 = vmatmul.f32.gmra.mxu3 %v321_v43  ;;  %v342_v53 = vpop.f32.mrf.mxu2  ;;  %v354_v57 = vpop.f32.mrf.mxu3  ;;  %v1687_v43 = vld [vmem:[%s2986_s3 + $0x158] sm:$0xff] }
  0xb6   : > { %421 = vmatmul.f32.gmra.mxu1 %v1625_v45  ;;  %v1662_v45 = vld [vmem:[%s2986_s3 + $0x90] sm:$0xff] }
  0xb7   : > { %516 = vmatmul.f32.gmra.mxu2 %v1917_v3  ;;  %v758_v3 = vld [vmem:[%s2986_s3 + $0x70] sm:$0xff]  ;;  %790 = vmatpush.msra.mxu1 %v1662_v45 }
  0xb8   : > { %843 = vmatpush.msra.mxu2 %v758_v3  ;;  %v1676_v3 = vld [vmem:[%s2986_s3 + $0x100] sm:$0xff] }
  0xbb   : > { %v324_v46 = vpop.f32.mrf.mxu0  ;;  %v336_v47 = vpop.f32.mrf.mxu1 }
  0xbc   : > { %551 = vmatmul.f32.gmra.mxu3 %v324_v46  ;;  %v345_v7 = vpop.f32.mrf.mxu2  ;;  %v1686_v46 = vld [vmem:[%s2986_s3 + $0x150] sm:$0xff] }
  0xbe   : > { %424 = vmatmul.f32.gmra.mxu1 %v1626_v48  ;;  %v1685_v48 = vld [vmem:[%s2986_s3 + $0x148] sm:$0xff] }
  0xbf   : > { %519 = vmatmul.f32.gmra.mxu2 %v1910_v2  ;;  %v757_v2 = vld [vmem:[%s2986_s3 + $0x68] sm:$0xff] }
  0xc0   : > { %844 = vmatpush.msra.mxu2 %v757_v2 }
  0xc3   : > { %v327_v11 = vpop.f32.mrf.mxu0  ;;  %v339_v49 = vpop.f32.mrf.mxu1 }
  0xc4   : > { %554 = vmatmul.f32.gmra.mxu3 %v327_v11  ;;  %v348_v6 = vpop.f32.mrf.mxu2 }
  0xc6   : > { %427 = vmatmul.f32.gmra.mxu1 %v1627_v50  ;;  %v1684_v50 = vld [vmem:[%s2986_s3 + $0x140] sm:$0xff] }
  0xc7   : > { %522 = vmatmul.f32.gmra.mxu2 %v1905_v1  ;;  %v756_v1 = vld [vmem:[%s2986_s3 + $0x60] sm:$0xff] }
  0xc8   : > { %845 = vmatpush.msra.mxu2 %v756_v1 }
  0xca   : > { %846 = vmatpush.msra.mxu2 %v755_v58 }
  0xcb   : > { %v383_v10 = vpop.f32.mrf.mxu1 }
  0xcc   : > { %557 = vmatmul.f32.gmra.mxu3 %v330_v41  ;;  %627 = vmatmul.f32.vlgmr.msrb.gmra.mxu0 %v383_v10  ;;  %v351_v5 = vpop.f32.mrf.mxu2  ;;  %v1688_v41 = vld [vmem:[%s2986_s3 + $0x160] sm:$0xff] }
  0xcd   : > { %847 = vmatpush.msra.mxu2 %v754_v60  ;;  %927 = vmatpush.msra.mxu3 %v1688_v41 }
  0xcf   : > { %525 = vmatmul.f32.gmra.mxu2 %v1902_v0  ;;  %v357_v0 = vpop.f32.mrf.mxu3  ;;  %928 = vmatpush.msra.mxu3 %v1687_v43 }
  0xd0   : > { %848 = vmatpush.msra.mxu2 %v753_v61 }
  0xd1   : > { %929 = vmatpush.msra.mxu3 %v1686_v46 }
  0xd2   : > { %849 = vmatpush.msra.mxu2 %v752_v62 }
  0xd3   : > { %v386_v51 = vpop.f32.mrf.mxu1  ;;  %930 = vmatpush.msra.mxu3 %v1685_v48 }
  0xd4   : > { %560 = vmatmul.f32.gmra.mxu3 %v333_v44  ;;  %630 = vmatmul.f32.gmra.mxu0 %v386_v51  ;;  %v1683_v51 = vld [vmem:[%s2986_s3 + $0x138] sm:$0xff] }
  0xd5   : > { %850 = vmatpush.msra.mxu2 %v751_v16  ;;  %931 = vmatpush.msra.mxu3 %v1684_v50 }
  0xd7   : > { %851 = vmatpush.msra.mxu2 %v750_v19  ;;  %v360_v24 = vpop.f32.mrf.mxu3  ;;  %932 = vmatpush.msra.mxu3 %v1683_v51 }
  0xd9   : > { %852 = vmatpush.msra.mxu2 %v749_v21 }
  0xda   : > { %v481_v12 = vpop.f32.mrf.mxu2 }
  0xdb   : > { %v389_v9 = vpop.f32.mrf.mxu1  ;;  %853 = vmatpush.msra.mxu2 %v748_v23 }
  0xdc   : > { %563 = vmatmul.f32.gmra.mxu3 %v336_v47  ;;  %633 = vmatmul.f32.gmra.mxu0 %v389_v9  ;;  %v1661_v47 = vld [vmem:[%s2986_s3 + $0x88] sm:$0xff] }
  0xdd   : > { %854 = vmatpush.msra.mxu2 %v747_v26  ;;  %791 = vmatpush.msra.mxu1 %v1661_v47 }
  0xdf   : > { %855 = vmatpush.msra.mxu2 %v746_v28  ;;  %v363_v13 = vpop.f32.mrf.mxu3 }
  0xe1   : > { %856 = vmatpush.msra.mxu2 %v745_v30 }
  0xe2   : > { %v484_v10 = vpop.f32.mrf.mxu2 }
  0xe3   : > { %v392_v52 = vpop.f32.mrf.mxu1  ;;  %857 = vmatpush.msra.mxu2 %v744_v14 }
  0xe4   : > { %566 = vmatmul.f32.gmra.mxu3 %v339_v49  ;;  %636 = vmatmul.f32.gmra.mxu0 %v392_v52  ;;  %v1660_v49 = vld [vmem:[%s2986_s3 + $0x80] sm:$0xff]  ;;  %v1682_v52 = vld [vmem:[%s2986_s3 + $0x130] sm:$0xff] }
  0xe5   : > { %858 = vmatmul.f32.vlgmr.msra.gmra.mxu2 %v1847_v32  ;;  %792 = vmatpush.msra.mxu1 %v1660_v49 }
  0xe6   : > { %933 = vmatpush.msra.mxu3 %v1682_v52 }
  0xeb   : > { %v395_v8 = vpop.f32.mrf.mxu1 }
  0xec   : > { %639 = vmatmul.f32.gmra.mxu0 %v395_v8  ;;  %569 = vmatmul.f32.gmra.mxu3 %v342_v53  ;;  %v1681_v53 = vld [vmem:[%s2986_s3 + $0x128] sm:$0xff] }
  0xed   : > { %861 = vmatmul.f32.gmra.mxu2 %v1847_v32  ;;  %934 = vmatpush.msra.mxu3 %v1681_v53 }
  0xf3   : > { %v398_v54 = vpop.f32.mrf.mxu1 }
  0xf4   : > { %642 = vmatmul.f32.gmra.mxu0 %v398_v54  ;;  %572 = vmatmul.f32.gmra.mxu3 %v345_v7  ;;  %v1680_v7 = vld [vmem:[%s2986_s3 + $0x120] sm:$0xff]  ;;  %v1679_v54 = vld [vmem:[%s2986_s3 + $0x118] sm:$0xff] }
  0xf5   : > { %935 = vmatpush.msra.mxu3 %v1680_v7 }
  0xf7   : > { %936 = vmatpush.msra.mxu3 %v1679_v54 }
  0xfb   : > { %v401_v55 = vpop.f32.mrf.mxu1 }
  0xfc   : > { %645 = vmatmul.f32.gmra.mxu0 %v401_v55  ;;  %575 = vmatmul.f32.gmra.mxu3 %v348_v6  ;;  %v487_v55 = vpop.f32.mrf.mxu2 }
 0x103   : > { %v404_v56 = vpop.f32.mrf.mxu1 }
 0x104   : > { %648 = vmatmul.f32.gmra.mxu0 %v404_v56  ;;  %578 = vmatmul.f32.gmra.mxu3 %v351_v5  ;;  %v1678_v5 = vld [vmem:[%s2986_s3 + $0x110] sm:$0xff]  ;;  %v490_v1 = vpop.f32.mrf.mxu2 }
 0x105   : > { %937 = vmatpush.msra.mxu3 %v1678_v5 }
 0x107   : > { %938 = vmatpush.msra.mxu3 %v1677_v4 }
 0x109   : > { %939 = vmatpush.msra.mxu3 %v1676_v3 }
 0x10b   : > { %v407_v59 = vpop.f32.mrf.mxu1 }
 0x10c   : > { %651 = vmatmul.f32.gmra.mxu0 %v407_v59  ;;  %581 = vmatmul.f32.gmra.mxu3 %v354_v57  ;;  %v2434_v59 = vld [vmem:[%s2988_s5] ss:$0 sm:$0xff]  ;;  %v493_v19 = vpop.f32.mrf.mxu2 }
 0x113   : > { %v410_v17 = vpop.f32.mrf.mxu1 }
 0x114   : > { %654 = vmatmul.f32.gmra.mxu0 %v410_v17  ;;  %584 = vmatmul.f32.gmra.mxu3 %v357_v0  ;;  %v2439_v0 = vld [vmem:[%s2988_s5 + $0x1] ss:$0 sm:$0xff]  ;;  %v496_v15 = vpop.f32.mrf.mxu2 }
 0x11b   : > { %v413_v27 = vpop.f32.mrf.mxu1 }
 0x11c   : > { %657 = vmatmul.f32.gmra.mxu0 %v413_v27  ;;  %587 = vmatmul.f32.gmra.mxu3 %v360_v24 }
 0x123   : > { %v416_v35 = vpop.f32.mrf.mxu1 }
 0x124   : > { %660 = vmatmul.f32.gmra.mxu0 %v416_v35  ;;  %590 = vmatmul.f32.gmra.mxu3 %v363_v13  ;;  %v499_v13 = vpop.f32.mrf.mxu2 }
 0x12b   : > { %v419_v44 = vpop.f32.mrf.mxu1 }
 0x12c   : > { %663 = vmatmul.f32.gmra.mxu0 %v419_v44  ;;  %v502_v43 = vpop.f32.mrf.mxu2 }
 0x12f   : > { %v546_v11 = vpop.f32.mrf.mxu3 }
 0x130   : > { %v547_v57 = vadd.f32 %v546_v11, %v481_v12 }
 0x133   : > { %v422_v9 = vpop.f32.mrf.mxu1 }
 0x134   : > { %666 = vmatmul.f32.gmra.mxu0 %v422_v9 }
 0x137   : > { %v549_v8 = vpop.f32.mrf.mxu3 }
 0x138   : > { %v550_v63 = vadd.f32 %v549_v8, %v484_v10  ;;  %v505_v10 = vpop.f32.mrf.mxu2 }
 0x13b   : > { %v425_v6 = vpop.f32.mrf.mxu1 }
 0x13c   : > { %669 = vmatmul.f32.gmra.mxu0 %v425_v6 }
 0x13f   : > { %v552_v56 = vpop.f32.mrf.mxu3 }
 0x140   : > { %v553_v23 = vadd.f32 %v552_v56, %v487_v55  ;;  %v508_v5 = vpop.f32.mrf.mxu2 }
 0x143   : > { %v428_v2 = vpop.f32.mrf.mxu1 }
 0x144   : > { %672 = vmatmul.f32.gmra.mxu0 %v428_v2 }
 0x147   : > { %v555_v58 = vpop.f32.mrf.mxu3 }
 0x148   : > { %v556_v30 = vadd.f32 %v555_v58, %v490_v1 }
 0x149   : > { %v628_v60 = vpop.f32.mrf.mxu0 }
 0x14a   : > { %v676_v61 = vadd.f32 %v628_v60, %v547_v57 }
 0x14c   : > { %v694_v62 = vmul.f32 %v2434_v59, %v676_v61 }
 0x14e   : > { %v712_v16 = vadd.f32 %v2439_v0, %v694_v62  ;;  %v511_v62 = vpop.f32.mrf.mxu2 }
 0x14f   : > { %v558_v17 = vpop.f32.mrf.mxu3 }
 0x150   : > { %v2443_v18 = vmax.f32 %v712_v16, 0.0  ;;  %v559_v38 = vadd.f32 %v558_v17, %v493_v19 }
 0x151   : > { %v631_v20 = vpop.f32.mrf.mxu0 }
 0x152   : > { %v677_v21 = vadd.f32 %v631_v20, %v550_v63  ;;  %793 = vmatmul.f32.vlgmr.msra.gmra.mxu1 %v2443_v18  ;;  %864 = vmatmul.f32.gmra.mxu2 %v2443_v18 }
 0x154   : > { %v695_v22 = vmul.f32 %v2434_v59, %v677_v21 }
 0x156   : > { %v713_v24 = vadd.f32 %v2439_v0, %v695_v22 }
 0x157   : > { %v561_v26 = vpop.f32.mrf.mxu3 }
 0x158   : > { %v2449_v25 = vmax.f32 %v713_v24, 0.0  ;;  %v562_v45 = vadd.f32 %v561_v26, %v496_v15  ;;  %v514_v24 = vpop.f32.mrf.mxu2 }
 0x159   : > { %v634_v27 = vpop.f32.mrf.mxu0 }
 0x15a   : > { %v678_v28 = vadd.f32 %v634_v27, %v553_v23  ;;  %796 = vmatmul.f32.gmra.mxu1 %v2449_v25  ;;  %867 = vmatmul.f32.gmra.mxu2 %v2449_v25 }
 0x15c   : > { %v696_v29 = vmul.f32 %v2434_v59, %v678_v28 }
 0x15e   : > { %v714_v31 = vadd.f32 %v2439_v0, %v696_v29 }
 0x15f   : > { %v564_v35 = vpop.f32.mrf.mxu3 }
 0x160   : > { %v2455_v14 = vmax.f32 %v714_v31, 0.0  ;;  %v565_v51 = vadd.f32 %v564_v35, %v499_v13  ;;  %v517_v35 = vpop.f32.mrf.mxu2 }
 0x161   : > { %v637_v33 = vpop.f32.mrf.mxu0 }
 0x162   : > { %v679_v34 = vadd.f32 %v637_v33, %v556_v30  ;;  %799 = vmatmul.f32.gmra.mxu1 %v2455_v14  ;;  %870 = vmatmul.f32.gmra.mxu2 %v2455_v14 }
 0x163   : > { %940 = vmatmul.f32.vlgmr.msra.gmra.mxu3 %v2455_v14 }
 0x164   : > { %v697_v36 = vmul.f32 %v2434_v59, %v679_v34 }
 0x166   : > { %v715_v37 = vadd.f32 %v2439_v0, %v697_v36 }
 0x167   : > { %v567_v42 = vpop.f32.mrf.mxu3 }
 0x168   : > { %v2462_v39 = vmax.f32 %v715_v37, 0.0  ;;  %v568_v6 = vadd.f32 %v567_v42, %v502_v43  ;;  %v520_v43 = vpop.f32.mrf.mxu2 }
 0x169   : > { %v640_v12 = vpop.f32.mrf.mxu0 }
 0x16a   : > { %v680_v40 = vadd.f32 %v640_v12, %v559_v38  ;;  %802 = vmatmul.f32.gmra.mxu1 %v2462_v39  ;;  %873 = vmatmul.f32.gmra.mxu2 %v2462_v39 }
 0x16b   : > { %943 = vmatmul.f32.gmra.mxu3 %v2462_v39 }
 0x16c   : > { %v698_v41 = vmul.f32 %v2434_v59, %v680_v40 }
 0x16e   : > { %v716_v44 = vadd.f32 %v2439_v0, %v698_v41 }
 0x16f   : > { %v570_v49 = vpop.f32.mrf.mxu3 }
 0x170   : > { %v2469_v46 = vmax.f32 %v716_v44, 0.0  ;;  %v571_v57 = vadd.f32 %v570_v49, %v505_v10 }
 0x171   : > { %v643_v47 = vpop.f32.mrf.mxu0 }
 0x172   : > { %v681_v48 = vadd.f32 %v643_v47, %v562_v45  ;;  %805 = vmatmul.f32.gmra.mxu1 %v2469_v46  ;;  %876 = vmatmul.f32.gmra.mxu2 %v2469_v46 }
 0x173   : > { %946 = vmatmul.f32.gmra.mxu3 %v2469_v46 }
 0x174   : > { %v699_v11 = vmul.f32 %v2434_v59, %v681_v48 }
 0x176   : > { %v717_v50 = vadd.f32 %v2439_v0, %v699_v11 }
 0x177   : > { %v573_v54 = vpop.f32.mrf.mxu3 }
 0x178   : > { %v2476_v9 = vmax.f32 %v717_v50, 0.0  ;;  %v574_v17 = vadd.f32 %v573_v54, %v508_v5  ;;  %v1707_v50 = vld [vmem:[%s2987_s4 + $0xf8] sm:$0xff]  ;;  %v1705_v54 = vld [vmem:[%s2987_s4 + $0xe8] sm:$0xff] }
 0x179   : > { %v646_v52 = vpop.f32.mrf.mxu0  ;;  %1236 = vmatpush.msrb.mxu2 %v1707_v50  ;;  %v2608_v50 = vld [vmem:[%s2988_s5 + $0x3] ss:$0 sm:$0xff] }
 0x17a   : > { %v682_v53 = vadd.f32 %v646_v52, %v565_v51  ;;  %808 = vmatmul.f32.gmra.mxu1 %v2476_v9  ;;  %879 = vmatmul.f32.gmra.mxu2 %v2476_v9 }
 0x17b   : > { %949 = vmatmul.f32.gmra.mxu3 %v2476_v9 }
 0x17c   : > { %v700_v8 = vmul.f32 %v2434_v59, %v682_v53  ;;  %v523_v53 = vpop.f32.mrf.mxu2 }
 0x17e   : > { %v718_v7 = vadd.f32 %v2439_v0, %v700_v8  ;;  %v1706_v8 = vld [vmem:[%s2987_s4 + $0xf0] sm:$0xff] }
 0x17f   : > { %v576_v60 = vpop.f32.mrf.mxu3  ;;  %1237 = vmatpush.msrb.mxu2 %v1706_v8 }
 0x180   : > { %v2483_v55 = vmax.f32 %v718_v7, 0.0  ;;  %v577_v27 = vadd.f32 %v576_v60, %v511_v62  ;;  %v1702_v60 = vld [vmem:[%s2987_s4 + $0xd0] sm:$0xff] }
 0x181   : > { %v649_v4 = vpop.f32.mrf.mxu0  ;;  %1238 = vmatpush.msrb.mxu2 %v1705_v54 }
 0x182   : > { %v683_v56 = vadd.f32 %v649_v4, %v568_v6  ;;  %811 = vmatmul.f32.gmra.mxu1 %v2483_v55  ;;  %882 = vmatmul.f32.gmra.mxu2 %v2483_v55  ;;  %v1704_v4 = vld [vmem:[%s2987_s4 + $0xe0] sm:$0xff] }
 0x183   : > { %952 = vmatmul.f32.gmra.mxu3 %v2483_v55  ;;  %1239 = vmatpush.msrb.mxu2 %v1704_v4 }
 0x184   : > { %v701_v3 = vmul.f32 %v2434_v59, %v683_v56  ;;  %v526_v62 = vpop.f32.mrf.mxu2 }
 0x186   : > { %v719_v2 = vadd.f32 %v2439_v0, %v701_v3  ;;  %v1703_v3 = vld [vmem:[%s2987_s4 + $0xd8] sm:$0xff] }
 0x187   : > { %v579_v22 = vpop.f32.mrf.mxu3  ;;  %1240 = vmatpush.msrb.mxu2 %v1703_v3 }
 0x188   : > { %v2490_v1 = vmax.f32 %v719_v2, 0.0  ;;  %v580_v34 = vadd.f32 %v579_v22, %v514_v24  ;;  %v1699_v22 = vld [vmem:[%s2987_s4 + $0xb8] sm:$0xff] }
 0x189   : > { %v652_v58 = vpop.f32.mrf.mxu0  ;;  %1241 = vmatpush.msrb.mxu2 %v1702_v60 }
 0x18a   : > { %v684_v61 = vadd.f32 %v652_v58, %v571_v57  ;;  %814 = vmatmul.f32.gmra.mxu1 %v2490_v1  ;;  %885 = vmatmul.f32.gmra.mxu2 %v2490_v1 }
 0x18b   : > { %955 = vmatmul.f32.gmra.mxu3 %v2490_v1 }
 0x18c   : > { %v702_v63 = vmul.f32 %v2434_v59, %v684_v61 }
 0x18e   : > { %v720_v16 = vadd.f32 %v2439_v0, %v702_v63  ;;  %v1701_v63 = vld [vmem:[%s2987_s4 + $0xc8] sm:$0xff] }
 0x18f   : > { %v582_v31 = vpop.f32.mrf.mxu3  ;;  %1242 = vmatpush.msrb.mxu2 %v1701_v63 }
 0x190   : > { %v2497_v19 = vmax.f32 %v720_v16, 0.0  ;;  %v583_v40 = vadd.f32 %v582_v31, %v517_v35  ;;  %v1696_v31 = vld [vmem:[%s2987_s4 + $0xa0] sm:$0xff] }
 0x191   : > { %v655_v20 = vpop.f32.mrf.mxu0 }
 0x192   : > { %v685_v21 = vadd.f32 %v655_v20, %v574_v17  ;;  %817 = vmatmul.f32.gmra.mxu1 %v2497_v19  ;;  %888 = vmatmul.f32.gmra.mxu2 %v2497_v19  ;;  %v1700_v20 = vld [vmem:[%s2987_s4 + $0xc0] sm:$0xff] }
 0x193   : > { %958 = vmatmul.f32.gmra.mxu3 %v2497_v19  ;;  %1243 = vmatpush.msrb.mxu2 %v1700_v20 }
 0x194   : > { %v703_v23 = vmul.f32 %v2434_v59, %v685_v21 }
 0x195   : > { %1244 = vmatpush.msrb.mxu2 %v1699_v22 }
 0x196   : > { %v721_v26 = vadd.f32 %v2439_v0, %v703_v23 }
 0x197   : > { %v585_v41 = vpop.f32.mrf.mxu3 }
 0x198   : > { %v2504_v15 = vmax.f32 %v721_v26, 0.0  ;;  %v586_v11 = vadd.f32 %v585_v41, %v520_v43  ;;  %v1698_v26 = vld [vmem:[%s2987_s4 + $0xb0] sm:$0xff] }
 0x199   : > { %v658_v28 = vpop.f32.mrf.mxu0  ;;  %1245 = vmatpush.msrb.mxu2 %v1698_v26 }
 0x19a   : > { %v686_v29 = vadd.f32 %v658_v28, %v577_v27  ;;  %820 = vmatmul.f32.gmra.mxu1 %v2504_v15  ;;  %891 = vmatmul.f32.gmra.mxu2 %v2504_v15  ;;  %v1697_v28 = vld [vmem:[%s2987_s4 + $0xa8] sm:$0xff] }
 0x19b   : > { %961 = vmatmul.f32.gmra.mxu3 %v2504_v15  ;;  %1246 = vmatpush.msrb.mxu2 %v1697_v28 }
 0x19c   : > { %v704_v30 = vmul.f32 %v2434_v59, %v686_v29  ;;  %v859_v29 = vpop.f32.mrf.mxu2 }
 0x19d   : > { %1247 = vmatpush.msrb.mxu2 %v1696_v31 }
 0x19e   : > { %v722_v33 = vadd.f32 %v2439_v0, %v704_v30 }
 0x19f   : > { %v588_v51 = vpop.f32.mrf.mxu3 }
 0x1a0   : > { %v2511_v13 = vmax.f32 %v722_v33, 0.0  ;;  %v589_v5 = vadd.f32 %v588_v51, %v523_v53 }
 0x1a1   : > { %v661_v36 = vpop.f32.mrf.mxu0 }
 0x1a2   : > { %v687_v37 = vadd.f32 %v661_v36, %v580_v34  ;;  %823 = vmatmul.f32.gmra.mxu1 %v2511_v13  ;;  %894 = vmatmul.f32.gmra.mxu2 %v2511_v13  ;;  %v1693_v34 = vld [vmem:[%s2987_s4 + $0x88] sm:$0xff]  ;;  %v1692_v36 = vld [vmem:[%s2987_s4 + $0x80] sm:$0xff] }
 0x1a3   : > { %964 = vmatmul.f32.gmra.mxu3 %v2511_v13 }
 0x1a4   : > { %v705_v38 = vmul.f32 %v2434_v59, %v687_v37  ;;  %v862_v37 = vpop.f32.mrf.mxu2 }
 0x1a6   : > { %v723_v12 = vadd.f32 %v2439_v0, %v705_v38 }
 0x1a7   : > { %v591_v58 = vpop.f32.mrf.mxu3 }
 0x1a8   : > { %v2518_v42 = vmax.f32 %v723_v12, 0.0  ;;  %v592_v16 = vadd.f32 %v591_v58, %v526_v62 }
 0x1a9   : > { %v664_v44 = vpop.f32.mrf.mxu0 }
 0x1aa   : > { %v688_v45 = vadd.f32 %v664_v44, %v583_v40  ;;  %826 = vmatmul.f32.gmra.mxu1 %v2518_v42  ;;  %897 = vmatmul.f32.gmra.mxu2 %v2518_v42  ;;  %v2602_v44 = vld [vmem:[%s2988_s5 + $0x2] ss:$0 sm:$0xff] }
 0x1ab   : > { %967 = vmatmul.f32.gmra.mxu3 %v2518_v42 }
 0x1ac   : > { %v706_v47 = vmul.f32 %v2434_v59, %v688_v45 }
 0x1ae   : > { %v724_v48 = vadd.f32 %v2439_v0, %v706_v47 }
 0x1b0   : > { %v2525_v49 = vmax.f32 %v724_v48, 0.0 }
 0x1b1   : > { %v667_v10 = vpop.f32.mrf.mxu0 }
 0x1b2   : > { %v689_v52 = vadd.f32 %v667_v10, %v586_v11  ;;  %829 = vmatmul.f32.gmra.mxu1 %v2525_v49  ;;  %900 = vmatmul.f32.gmra.mxu2 %v2525_v49 }
 0x1b3   : > { %970 = vmatmul.f32.gmra.mxu3 %v2525_v49 }
 0x1b4   : > { %v707_v7 = vmul.f32 %v2434_v59, %v689_v52 }
 0x1b6   : > { %v725_v6 = vadd.f32 %v2439_v0, %v707_v7 }
 0x1b8   : > { %v2544_v56 = vmax.f32 %v725_v6, 0.0 }
 0x1b9   : > { %v670_v2 = vpop.f32.mrf.mxu0 }
 0x1ba   : > { %v690_v57 = vadd.f32 %v670_v2, %v589_v5  ;;  %832 = vmatmul.f32.gmra.mxu1 %v2544_v56  ;;  %903 = vmatmul.f32.gmra.mxu2 %v2544_v56 }
 0x1bb   : > { %973 = vmatmul.f32.gmra.mxu3 %v2544_v56 }
 0x1bc   : > { %v708_v61 = vmul.f32 %v2434_v59, %v690_v57 }
 0x1be   : > { %v726_v17 = vadd.f32 %v2439_v0, %v708_v61 }
 0x1c0   : > { %v2563_v21 = vmax.f32 %v726_v17, 0.0 }
 0x1c1   : > { %v673_v23 = vpop.f32.mrf.mxu0 }
 0x1c2   : > { %v691_v24 = vadd.f32 %v673_v23, %v592_v16  ;;  %835 = vmatmul.f32.gmra.mxu1 %v2563_v21 }
 0x1c3   : > { %976 = vmatmul.f32.gmra.mxu3 %v2563_v21 }
 0x1c4   : > { %v709_v27 = vmul.f32 %v2434_v59, %v691_v24  ;;  %v1695_v59 = vld [vmem:[%s2987_s4 + $0x98] sm:$0xff] }
 0x1c5   : > { %1248 = vmatpush.msrb.mxu2 %v1695_v59 }
 0x1c6   : > { %v727_v30 = vadd.f32 %v2439_v0, %v709_v27  ;;  %v1694_v0 = vld [vmem:[%s2987_s4 + $0x90] sm:$0xff] }
 0x1c7   : > { %1249 = vmatpush.msrb.mxu2 %v1694_v0 }
 0x1c8   : > { %v2581_v33 = vmax.f32 %v727_v30, 0.0 }
 0x1c9   : > { %1250 = vmatpush.msrb.mxu2 %v1693_v34 }
 0x1ca   : > { %838 = vmatmul.f32.gmra.mxu1 %v2581_v33 }
 0x1cb   : > { %979 = vmatmul.f32.gmra.mxu3 %v2581_v33  ;;  %1251 = vmatpush.msrb.mxu2 %v1692_v36 }
 0x1cf   : > { %v794_v35 = vpop.f32.mrf.mxu1 }
 0x1d0   : > { %v860_v43 = vadd.f32 %v859_v29, %v794_v35 }
 0x1d3   : > { %982 = vmatmul.f32.gmra.mxu3 %v1847_v32 }
 0x1d5   : > { %v865_v12 = vpop.f32.mrf.mxu2 }
 0x1d7   : > { %v797_v38 = vpop.f32.mrf.mxu1 }
 0x1d8   : > { %v863_v10 = vadd.f32 %v862_v37, %v797_v38 }
 0x1db   : > { %985 = vmatmul.f32.gmra.mxu3 %v1847_v32 }
 0x1dd   : > { %v868_v41 = vpop.f32.mrf.mxu2 }
 0x1df   : > { %v800_v40 = vpop.f32.mrf.mxu1 }
 0x1e0   : > { %v866_v4 = vadd.f32 %v865_v12, %v800_v40 }
 0x1e5   : > { %v871_v52 = vpop.f32.mrf.mxu2 }
 0x1e6   : > { %v941_v45 = vpop.f32.mrf.mxu3 }
 0x1e7   : > { %v989_v47 = vadd.f32 %v941_v45, %v860_v43  ;;  %v803_v48 = vpop.f32.mrf.mxu1 }
 0x1e8   : > { %v869_v63 = vadd.f32 %v868_v41, %v803_v48 }
 0x1e9   : > { %v1007_v11 = vmul.f32 %v2602_v44, %v989_v47 }
 0x1eb   : > { %v1023_v32 = vadd.f32 %v1007_v11, %v2443_v18 }
 0x1ed   : > { %v1041_v51 = vadd.f32 %v2608_v50, %v1023_v32  ;;  %v874_v60 = vpop.f32.mrf.mxu2 }
 0x1ee   : > { %v944_v53 = vpop.f32.mrf.mxu3 }
 0x1ef   : > { %v2612_v8 = vmax.f32 %v1041_v51, 0.0  ;;  %v990_v7 = vadd.f32 %v944_v53, %v863_v10  ;;  %v806_v54 = vpop.f32.mrf.mxu1 }
 0x1f0   : > { %v872_v27 = vadd.f32 %v871_v52, %v806_v54 }
 0x1f1   : > { %v1008_v6 = vmul.f32 %v2602_v44, %v990_v7  ;;  %1252 = vmatmul.f32.vlgmr.msrb.gmra.mxu2 %v2612_v8 }
 0x1f3   : > { %v1024_v5 = vadd.f32 %v1008_v6, %v2449_v25 }
 0x1f5   : > { %v1042_v3 = vadd.f32 %v2608_v50, %v1024_v5  ;;  %v877_v24 = vpop.f32.mrf.mxu2 }
 0x1f6   : > { %v947_v2 = vpop.f32.mrf.mxu3 }
 0x1f7   : > { %v991_v18 = vadd.f32 %v947_v2, %v866_v4  ;;  %v809_v57 = vpop.f32.mrf.mxu1  ;;  %v2618_v58 = vmax.f32 %v1042_v3, 0.0 }
 0x1f8   : > { %v875_v35 = vadd.f32 %v874_v60, %v809_v57 }
 0x1f9   : > { %v1009_v61 = vmul.f32 %v2602_v44, %v991_v18  ;;  %1255 = vmatmul.f32.gmra.mxu2 %v2618_v58 }
 0x1fb   : > { %v1025_v62 = vadd.f32 %v1009_v61, %v2455_v14 }
 0x1fd   : > { %v1043_v16 = vadd.f32 %v2608_v50, %v1025_v62  ;;  %v880_v34 = vpop.f32.mrf.mxu2 }
 0x1fe   : > { %v950_v17 = vpop.f32.mrf.mxu3 }
 0x1ff   : > { %v992_v25 = vadd.f32 %v950_v17, %v869_v63  ;;  %v2624_v20 = vmax.f32 %v1043_v16, 0.0  ;;  %v812_v22 = vpop.f32.mrf.mxu1 }
 0x200   : > { %v878_v43 = vadd.f32 %v877_v24, %v812_v22 }
 0x201   : > { %v1010_v23 = vmul.f32 %v2602_v44, %v992_v25  ;;  %1258 = vmatmul.f32.gmra.mxu2 %v2624_v20 }
 0x203   : > { %v1026_v26 = vadd.f32 %v1010_v23, %v2462_v39 }
 0x205   : > { %v1044_v28 = vadd.f32 %v2608_v50, %v1026_v26  ;;  %v883_v47 = vpop.f32.mrf.mxu2 }
 0x206   : > { %v953_v29 = vpop.f32.mrf.mxu3 }
 0x207   : > { %v993_v14 = vadd.f32 %v953_v29, %v872_v27  ;;  %v2630_v30 = vmax.f32 %v1044_v28, 0.0  ;;  %v815_v59 = vpop.f32.mrf.mxu1 }
 0x208   : > { %v881_v51 = vadd.f32 %v880_v34, %v815_v59 }
 0x209   : > { %v1011_v31 = vmul.f32 %v2602_v44, %v993_v14  ;;  %1261 = vmatmul.f32.gmra.mxu2 %v2630_v30 }
 0x20b   : > { %v1027_v0 = vadd.f32 %v1011_v31, %v2469_v46 }
 0x20d   : > { %v1045_v36 = vadd.f32 %v2608_v50, %v1027_v0  ;;  %v886_v6 = vpop.f32.mrf.mxu2 }
 0x20e   : > { %v956_v37 = vpop.f32.mrf.mxu3 }
 0x20f   : > { %v994_v39 = vadd.f32 %v956_v37, %v875_v35  ;;  %v2636_v38 = vmax.f32 %v1045_v36, 0.0  ;;  %v818_v41 = vpop.f32.mrf.mxu1 }
 0x210   : > { %v884_v3 = vadd.f32 %v883_v47, %v818_v41 }
 0x211   : > { %v1012_v12 = vmul.f32 %v2602_v44, %v994_v39  ;;  %1264 = vmatmul.f32.gmra.mxu2 %v2636_v38 }
 0x213   : > { %v1028_v40 = vadd.f32 %v1012_v12, %v2476_v9 }
 0x215   : > { %v1046_v45 = vadd.f32 %v2608_v50, %v1028_v40  ;;  %v889_v62 = vpop.f32.mrf.mxu2 }
 0x216   : > { %v959_v46 = vpop.f32.mrf.mxu3 }
 0x217   : > { %v995_v48 = vadd.f32 %v959_v46, %v878_v43  ;;  %v2642_v11 = vmax.f32 %v1046_v45, 0.0  ;;  %v821_v53 = vpop.f32.mrf.mxu1 }
 0x218   : > { %v887_v16 = vadd.f32 %v886_v6, %v821_v53 }
 0x219   : > { %v1013_v32 = vmul.f32 %v2602_v44, %v995_v48  ;;  %1267 = vmatmul.f32.gmra.mxu2 %v2642_v11 }
 0x21b   : > { %v1029_v10 = vadd.f32 %v1013_v32, %v2483_v55 }
 0x21d   : > { %v1047_v52 = vadd.f32 %v2608_v50, %v1029_v10  ;;  %v892_v27 = vpop.f32.mrf.mxu2 }
 0x21e   : > { %v962_v9 = vpop.f32.mrf.mxu3 }
 0x21f   : > { %v996_v7 = vadd.f32 %v962_v9, %v881_v51  ;;  %v2648_v54 = vmax.f32 %v1047_v52, 0.0  ;;  %v824_v60 = vpop.f32.mrf.mxu1 }
 0x220   : > { %v890_v28 = vadd.f32 %v889_v62, %v824_v60 }
 0x221   : > { %v1014_v5 = vmul.f32 %v2602_v44, %v996_v7  ;;  %1270 = vmatmul.f32.gmra.mxu2 %v2648_v54 }
 0x223   : > { %v1030_v4 = vadd.f32 %v1014_v5, %v2490_v1 }
 0x225   : > { %v1048_v2 = vadd.f32 %v2608_v50, %v1030_v4  ;;  %v895_v37 = vpop.f32.mrf.mxu2 }
 0x226   : > { %v965_v18 = vpop.f32.mrf.mxu3 }
 0x227   : > { %v997_v55 = vadd.f32 %v965_v18, %v884_v3  ;;  %v2654_v57 = vmax.f32 %v1048_v2, 0.0  ;;  %v827_v24 = vpop.f32.mrf.mxu1 }
 0x228   : > { %v893_v35 = vadd.f32 %v892_v27, %v827_v24 }
 0x229   : > { %v1015_v61 = vmul.f32 %v2602_v44, %v997_v55  ;;  %1273 = vmatmul.f32.gmra.mxu2 %v2654_v57 }
 0x22b   : > { %v1031_v63 = vadd.f32 %v1015_v61, %v2497_v19 }
 0x22d   : > { %v1049_v17 = vadd.f32 %v2608_v50, %v1031_v63  ;;  %v898_v32 = vpop.f32.mrf.mxu2 }
 0x22e   : > { %v968_v25 = vpop.f32.mrf.mxu3 }
 0x22f   : > { %v998_v1 = vadd.f32 %v968_v25, %v887_v16  ;;  %v2660_v22 = vmax.f32 %v1049_v17, 0.0  ;;  %v830_v34 = vpop.f32.mrf.mxu1 }
 0x230   : > { %v896_v43 = vadd.f32 %v895_v37, %v830_v34  ;;  %v1217_v34 = vld [vmem:[%s2987_s4 + $0x70] sm:$0xff]  ;;  %v1723_v37 = vld [vmem:[%s2987_s4 + $0x178] sm:$0xff] }
 0x231   : > { %v1016_v23 = vmul.f32 %v2602_v44, %v998_v1  ;;  %1276 = vmatmul.f32.gmra.mxu2 %v2660_v22 }
 0x233   : > { %v1032_v26 = vadd.f32 %v1016_v23, %v2504_v15 }
 0x235   : > { %v1050_v29 = vadd.f32 %v2608_v50, %v1032_v26  ;;  %v901_v4 = vpop.f32.mrf.mxu2 }
 0x236   : > { %v971_v14 = vpop.f32.mrf.mxu3 }
 0x237   : > { %v999_v19 = vadd.f32 %v971_v14, %v890_v28  ;;  %v2666_v31 = vmax.f32 %v1050_v29, 0.0  ;;  %v833_v47 = vpop.f32.mrf.mxu1  ;;  %v1804_v29 = vld [vmem:[%s2984_s1 + $0xb0] sm:$0xff]  ;;  %v1805_v14 = vld [vmem:[%s2984_s1 + $0x38] sm:$0xff] }
 0x238   : > { %v899_v52 = vadd.f32 %v898_v32, %v833_v47  ;;  %v1720_v47 = vld [vmem:[%s2987_s4 + $0x160] sm:$0xff]  ;;  %v1811_v32 = vld [vmem:[%s2984_s1 + $0x50] sm:$0xff] }
 0x239   : > { %v1017_v59 = vmul.f32 %v2602_v44, %v999_v19  ;;  %1279 = vmatmul.f32.gmra.mxu2 %v2666_v31  ;;  %v1806_v19 = vld [vmem:[%s2984_s1 + $0xb8] sm:$0xff] }
 0x23b   : > { %v1033_v0 = vadd.f32 %v1017_v59, %v2511_v13  ;;  %v1807_v59 = vld [vmem:[%s2984_s1 + $0x40] sm:$0xff] }
 0x23d   : > { %v1051_v36 = vadd.f32 %v2608_v50, %v1033_v0  ;;  %v904_v16 = vpop.f32.mrf.mxu2  ;;  %v1808_v0 = vld [vmem:[%s2984_s1 + $0xc0] sm:$0xff] }
 0x23e   : > { %v974_v15 = vpop.f32.mrf.mxu3 }
 0x23f   : > { %v1000_v39 = vadd.f32 %v974_v15, %v893_v35  ;;  %v1067_v12 = vmax.f32 %v1051_v36, 0.0  ;;  %v1216_v35 = vld [vmem:[%s2987_s4 + $0x68] sm:$0xff]  ;;  %v1215_v36 = vld [vmem:[%s2987_s4 + $0x60] sm:$0xff]  ;;  %v1214_v15 = vld [vmem:[%s2987_s4 + $0x58] sm:$0xff] }
 0x241   : > { %v1018_v40 = vmul.f32 %v2602_v44, %v1000_v39  ;;  %1282 = vmatmul.f32.gmra.mxu2 %v1067_v12  ;;  %v1809_v39 = vld [vmem:[%s2984_s1 + $0x48] sm:$0xff] }
 0x243   : > { %v1034_v41 = vadd.f32 %v1018_v40, %v2518_v42  ;;  %v836_v42 = vpop.f32.mrf.mxu1  ;;  %v1213_v40 = vld [vmem:[%s2987_s4 + $0x50] sm:$0xff] }
 0x244   : > { %v902_v2 = vadd.f32 %v901_v4, %v836_v42  ;;  %v1715_v42 = vld [vmem:[%s2987_s4 + $0x138] sm:$0xff] }
 0x245   : > { %v1052_v45 = vadd.f32 %v2608_v50, %v1034_v41  ;;  %v1722_v41 = vld [vmem:[%s2987_s4 + $0x170] sm:$0xff]  ;;  %v1813_v4 = vld [vmem:[%s2984_s1 + $0x58] sm:$0xff] }
 0x246   : > { %v977_v46 = vpop.f32.mrf.mxu3 }
 0x247   : > { %v1001_v48 = vadd.f32 %v977_v46, %v896_v43  ;;  %v1068_v13 = vmax.f32 %v1052_v45, 0.0  ;;  %v1721_v43 = vld [vmem:[%s2987_s4 + $0x168] sm:$0xff]  ;;  %v1211_v46 = vld [vmem:[%s2987_s4 + $0x40] sm:$0xff] }
 0x248   : > { %v1212_v45 = vld [vmem:[%s2987_s4 + $0x48] sm:$0xff] }
 0x249   : > { %v1019_v10 = vmul.f32 %v2602_v44, %v1001_v48  ;;  %1285 = vmatmul.f32.gmra.mxu2 %v1068_v13  ;;  %v1719_v48 = vld [vmem:[%s2987_s4 + $0x158] sm:$0xff] }
 0x24b   : > { %v1035_v51 = vadd.f32 %v1019_v10, %v2525_v49  ;;  %v839_v62 = vpop.f32.mrf.mxu1  ;;  %v1812_v10 = vld [vmem:[%s2984_s1 + $0xd0] sm:$0xff] }
 0x24c   : > { %v905_v17 = vadd.f32 %v904_v16, %v839_v62  ;;  %v1711_v62 = vld [vmem:[%s2987_s4 + $0x118] sm:$0xff]  ;;  %v1816_v16 = vld [vmem:[%s2984_s1 + $0xe0] sm:$0xff] }
 0x24d   : > { %v1053_v53 = vadd.f32 %v2608_v50, %v1035_v51  ;;  %v1209_v51 = vld [vmem:[%s2987_s4 + $0x30] sm:$0xff] }
 0x24e   : > { %v980_v9 = vpop.f32.mrf.mxu3 }
 0x24f   : > { %v1002_v7 = vadd.f32 %v980_v9, %v899_v52  ;;  %v1069_v6 = vmax.f32 %v1053_v53, 0.0  ;;  %v1718_v52 = vld [vmem:[%s2987_s4 + $0x150] sm:$0xff]  ;;  %v1717_v53 = vld [vmem:[%s2987_s4 + $0x148] sm:$0xff] }
 0x250   : > { %v1208_v9 = vld [vmem:[%s2987_s4 + $0x28] sm:$0xff] }
 0x251   : > { %v1020_v5 = vmul.f32 %v2602_v44, %v1002_v7  ;;  %1288 = vmatmul.f32.gmra.mxu2 %v1069_v6  ;;  %v1716_v7 = vld [vmem:[%s2987_s4 + $0x140] sm:$0xff] }
 0x253   : > { %v1036_v3 = vadd.f32 %v1020_v5, %v2544_v56  ;;  %v1206_v5 = vld [vmem:[%s2987_s4 + $0x18] sm:$0xff] }
 0x255   : > { %v1054_v18 = vadd.f32 %v2608_v50, %v1036_v3  ;;  %v1814_v3 = vld [vmem:[%s2984_s1 + $0xd8] sm:$0xff] }
 0x256   : > { %v983_v55 = vpop.f32.mrf.mxu3 }
 0x257   : > { %v1003_v60 = vadd.f32 %v983_v55, %v902_v2  ;;  %v1070_v61 = vmax.f32 %v1054_v18, 0.0  ;;  %v1205_v2 = vld [vmem:[%s2987_s4 + $0x10] sm:$0xff]  ;;  %v1713_v55 = vld [vmem:[%s2987_s4 + $0x128] sm:$0xff] }
 0x258   : > { %v1714_v18 = vld [vmem:[%s2987_s4 + $0x130] sm:$0xff] }
 0x259   : > { %v1021_v49 = vmul.f32 %v2602_v44, %v1003_v60  ;;  %1291 = vmatmul.f32.gmra.mxu2 %v1070_v61  ;;  %v1204_v60 = vld [vmem:[%s2987_s4 + $0x8] sm:$0xff] }
 0x25b   : > { %v1037_v63 = vadd.f32 %v1021_v49, %v2563_v21  ;;  %v1791_v21 = vld [vmem:[%s2984_s1] sm:$0xff] }
 0x25c   : > { %v1712_v49 = vld [vmem:[%s2987_s4 + $0x120] sm:$0xff] }
 0x25d   : > { %v1055_v25 = vadd.f32 %v2608_v50, %v1037_v63  ;;  %v1815_v63 = vld [vmem:[%s2984_s1 + $0x60] sm:$0xff] }
 0x25e   : > { %v986_v1 = vpop.f32.mrf.mxu3 }
 0x25f   : > { %v1004_v23 = vadd.f32 %v986_v1, %v905_v17  ;;  %v1071_v24 = vmax.f32 %v1055_v25, 0.0  ;;  %v1710_v17 = vld [vmem:[%s2987_s4 + $0x110] sm:$0xff]  ;;  %v1709_v25 = vld [vmem:[%s2987_s4 + $0x108] sm:$0xff]  ;;  %v1708_v1 = vld [vmem:[%s2987_s4 + $0x100] sm:$0xff] }
 0x261   : > { %v1022_v56 = vmul.f32 %v2602_v44, %v1004_v23  ;;  %1294 = vmatmul.f32.gmra.mxu2 %v1071_v24  ;;  %v1793_v44 = vld [vmem:[%s2984_s1 + $0x8] sm:$0xff] }
 0x262   : > { %v1817_v23 = vld [vmem:[%s2984_s1 + $0x68] sm:$0xff] }
 0x263   : > { %v1038_v26 = vadd.f32 %v1022_v56, %v2581_v33  ;;  %v1792_v33 = vld [vmem:[%s2984_s1 + $0x80] sm:$0xff]  ;;  %v1819_v56 = vld [vmem:[%s2984_s1 + $0x70] sm:$0xff] }
 0x265   : > { %v1056_v27 = vadd.f32 %v2608_v50, %v1038_v26  ;;  %v1794_v50 = vld [vmem:[%s2984_s1 + $0x88] sm:$0xff]  ;;  %v1820_v26 = vld [vmem:[%s2984_s1 + $0xf0] sm:$0xff] }
 0x267   : > { %v1072_v28 = vmax.f32 %v1056_v27, 0.0  ;;  %v1821_v27 = vld [vmem:[%s2984_s1 + $0x78] sm:$0xff] }
 0x269   : > { %1073 = vmatpush.msra.mxu0 %v1072_v28  ;;  %1138 = vmatpush.msrb.mxu1 %v1072_v28 }
 0x26a   : > { %1297 = vmatmul.f32.gmra.mxu2 %v1072_v28  ;;  %v1822_v28 = vld [vmem:[%s2984_s1 + $0xf8] sm:$0xff] }
 0x26b   : > { %1074 = vmatpush.msra.mxu0 %v1071_v24  ;;  %1139 = vmatpush.msrb.mxu1 %v1071_v24  ;;  %v1818_v24 = vld [vmem:[%s2984_s1 + $0xe8] sm:$0xff] }
 0x26d   : > { %1075 = vmatpush.msra.mxu0 %v1070_v61  ;;  %1140 = vmatpush.msrb.mxu1 %v1070_v61  ;;  %v1203_v61 = vld [vmem:[%s2987_s4] sm:$0xff] }
 0x26f   : > { %1076 = vmatpush.msra.mxu0 %v1069_v6  ;;  %1141 = vmatpush.msrb.mxu1 %v1069_v6  ;;  %v1207_v6 = vld [vmem:[%s2987_s4 + $0x20] sm:$0xff] }
 0x271   : > { %1077 = vmatpush.msra.mxu0 %v1068_v13  ;;  %1142 = vmatpush.msrb.mxu1 %v1068_v13  ;;  %v1210_v13 = vld [vmem:[%s2987_s4 + $0x38] sm:$0xff] }
 0x273   : > { %1078 = vmatpush.msra.mxu0 %v1067_v12  ;;  %1143 = vmatpush.msrb.mxu1 %v1067_v12  ;;  %v1810_v12 = vld [vmem:[%s2984_s1 + $0xc8] sm:$0xff] }
 0x275   : > { %1079 = vmatpush.msra.mxu0 %v2666_v31  ;;  %1144 = vmatpush.msrb.mxu1 %v2666_v31  ;;  %v1218_v31 = vld [vmem:[%s2987_s4 + $0x78] sm:$0xff] }
 0x276   : > { %1301 = vmatpush.msrb.mxu3 %v1218_v31 }
 0x277   : > { %1080 = vmatpush.msra.mxu0 %v2660_v22  ;;  %1145 = vmatpush.msrb.mxu1 %v2660_v22  ;;  %v1803_v22 = vld [vmem:[%s2984_s1 + $0x30] sm:$0xff] }
 0x278   : > { %1302 = vmatpush.msrb.mxu3 %v1217_v34 }
 0x279   : > { %1081 = vmatpush.msra.mxu0 %v2654_v57  ;;  %1146 = vmatpush.msrb.mxu1 %v2654_v57  ;;  %v1802_v57 = vld [vmem:[%s2984_s1 + $0xa8] sm:$0xff] }
 0x27a   : > { %1303 = vmatpush.msrb.mxu3 %v1216_v35 }
 0x27b   : > { %1082 = vmatpush.msra.mxu0 %v2648_v54  ;;  %1147 = vmatpush.msrb.mxu1 %v2648_v54  ;;  %v1801_v54 = vld [vmem:[%s2984_s1 + $0x28] sm:$0xff] }
 0x27c   : > { %1304 = vmatpush.msrb.mxu3 %v1215_v36 }
 0x27d   : > { %1083 = vmatpush.msra.mxu0 %v2642_v11  ;;  %1148 = vmatpush.msrb.mxu1 %v2642_v11  ;;  %v1800_v11 = vld [vmem:[%s2984_s1 + $0xa0] sm:$0xff] }
 0x27e   : > { %1305 = vmatpush.msrb.mxu3 %v1214_v15 }
 0x27f   : > { %1084 = vmatpush.msra.mxu0 %v2636_v38  ;;  %1149 = vmatpush.msrb.mxu1 %v2636_v38  ;;  %v1799_v38 = vld [vmem:[%s2984_s1 + $0x20] sm:$0xff] }
 0x280   : > { %1306 = vmatpush.msrb.mxu3 %v1213_v40  ;;  %v1253_v40 = vpop.f32.mrf.mxu2 }
 0x281   : > { %1085 = vmatpush.msra.mxu0 %v2630_v30  ;;  %1150 = vmatpush.msrb.mxu1 %v2630_v30  ;;  %v1798_v30 = vld [vmem:[%s2984_s1 + $0x98] sm:$0xff] }
 0x282   : > { %1307 = vmatpush.msrb.mxu3 %v1212_v45 }
 0x283   : > { %1086 = vmatpush.msra.mxu0 %v2624_v20  ;;  %1151 = vmatpush.msrb.mxu1 %v2624_v20  ;;  %v1797_v20 = vld [vmem:[%s2984_s1 + $0x18] sm:$0xff] }
 0x284   : > { %1308 = vmatpush.msrb.mxu3 %v1211_v46 }
 0x285   : > { %1087 = vmatpush.msra.mxu0 %v2618_v58  ;;  %1152 = vmatpush.msrb.mxu1 %v2618_v58  ;;  %v1796_v58 = vld [vmem:[%s2984_s1 + $0x90] sm:$0xff] }
 0x286   : > { %1309 = vmatpush.msrb.mxu3 %v1210_v13 }
 0x287   : > { %1088 = vmatpush.msra.mxu0 %v2612_v8  ;;  %1153 = vmatpush.msrb.mxu1 %v2612_v8  ;;  %v1795_v8 = vld [vmem:[%s2984_s1 + $0x10] sm:$0xff] }
 0x288   : > { %1089 = vmatmul.f32.vlgmr.msra.gmra.mxu0 %v1791_v21  ;;  %1154 = vmatmul.f32.vlgmr.msrb.gmra.mxu1 %v1792_v33  ;;  %v1256_v45 = vpop.f32.mrf.mxu2 }
 0x289   : > { %1383 = vmatpush.msrb.mxu0 %v1723_v37  ;;  %1310 = vmatpush.msrb.mxu3 %v1209_v51 }
 0x28b   : > { %1384 = vmatpush.msrb.mxu0 %v1722_v41  ;;  %1311 = vmatpush.msrb.mxu3 %v1208_v9  ;;  %v2902_v9 = vld [vmem:[%s2988_s5 + $0x4] ss:$0 sm:$0xff] }
 0x28d   : > { %1385 = vmatpush.msrb.mxu0 %v1721_v43  ;;  %1312 = vmatpush.msrb.mxu3 %v1207_v6  ;;  %v2907_v6 = vld [vmem:[%s2988_s5 + $0x5] ss:$0 sm:$0xff] }
 0x28f   : > { %1386 = vmatpush.msrb.mxu0 %v1720_v47  ;;  %1313 = vmatpush.msrb.mxu3 %v1206_v5 }
 0x290   : > { %1092 = vmatmul.f32.gmra.mxu0 %v1793_v44  ;;  %1157 = vmatmul.f32.gmra.mxu1 %v1794_v50 }
 0x291   : > { %1387 = vmatpush.msrb.mxu0 %v1719_v48  ;;  %1314 = vmatpush.msrb.mxu3 %v1205_v2 }
 0x293   : > { %1388 = vmatpush.msrb.mxu0 %v1718_v52  ;;  %1315 = vmatpush.msrb.mxu3 %v1204_v60 }
 0x295   : > { %1389 = vmatpush.msrb.mxu0 %v1717_v53  ;;  %1316 = vmatpush.msrb.mxu3 %v1203_v61 }
 0x297   : > { %1390 = vmatpush.msrb.mxu0 %v1716_v7 }
 0x298   : > { %1095 = vmatmul.f32.gmra.mxu0 %v1795_v8  ;;  %1160 = vmatmul.f32.gmra.mxu1 %v1796_v58 }
 0x299   : > { %1391 = vmatpush.msrb.mxu0 %v1715_v42 }
 0x29b   : > { %1392 = vmatpush.msrb.mxu0 %v1714_v18  ;;  %v1823_v18 = vld [vmem:[%s1899_s26] sm:$0xff] }
 0x29d   : > { %1393 = vmatpush.msrb.mxu0 %v1713_v55 }
 0x29f   : > { %1394 = vmatpush.msrb.mxu0 %v1712_v49 }
 0x2a0   : > { %1098 = vmatmul.f32.gmra.mxu0 %v1797_v20  ;;  %1163 = vmatmul.f32.gmra.mxu1 %v1798_v30 }
 0x2a1   : > { %1395 = vmatpush.msrb.mxu0 %v1711_v62 }
 0x2a3   : > { %1396 = vmatpush.msrb.mxu0 %v1710_v17 }
 0x2a5   : > { %1397 = vmatpush.msrb.mxu0 %v1709_v25  ;;  %v1824_v25 = vld [vmem:[%s1899_s26 + $0x8] sm:$0xff] }
 0x2a7   : > { %1398 = vmatpush.msrb.mxu0 %v1708_v1 }
 0x2a8   : > { %1101 = vmatmul.f32.gmra.mxu0 %v1799_v38  ;;  %1166 = vmatmul.f32.gmra.mxu1 %v1800_v11 }
 0x2b0   : > { %1104 = vmatmul.f32.gmra.mxu0 %v1801_v54  ;;  %1169 = vmatmul.f32.gmra.mxu1 %v1802_v57 }
 0x2b8   : > { %1107 = vmatmul.f32.gmra.mxu0 %v1803_v22  ;;  %1172 = vmatmul.f32.gmra.mxu1 %v1804_v29 }
 0x2c0   : > { %1110 = vmatmul.f32.gmra.mxu0 %v1805_v14  ;;  %1175 = vmatmul.f32.gmra.mxu1 %v1806_v19 }
 0x2c8   : > { %1113 = vmatmul.f32.gmra.mxu0 %v1807_v59  ;;  %1178 = vmatmul.f32.gmra.mxu1 %v1808_v0 }
 0x2d0   : > { %1116 = vmatmul.f32.gmra.mxu0 %v1809_v39  ;;  %1181 = vmatmul.f32.gmra.mxu1 %v1810_v12 }
 0x2d8   : > { %1119 = vmatmul.f32.gmra.mxu0 %v1811_v32  ;;  %1184 = vmatmul.f32.gmra.mxu1 %v1812_v10  ;;  %v1259_v32 = vpop.f32.mrf.mxu2 }
 0x2e0   : > { %1122 = vmatmul.f32.gmra.mxu0 %v1813_v4  ;;  %1187 = vmatmul.f32.gmra.mxu1 %v1814_v3  ;;  %v1262_v51 = vpop.f32.mrf.mxu2 }
 0x2e8   : > { %1125 = vmatmul.f32.gmra.mxu0 %v1815_v63  ;;  %1190 = vmatmul.f32.gmra.mxu1 %v1816_v16  ;;  %v1265_v2 = vpop.f32.mrf.mxu2 }
 0x2f0   : > { %1128 = vmatmul.f32.gmra.mxu0 %v1817_v23  ;;  %1193 = vmatmul.f32.gmra.mxu1 %v1818_v24  ;;  %v1268_v24 = vpop.f32.mrf.mxu2 }
 0x2f8   : > { %1131 = vmatmul.f32.gmra.mxu0 %v1819_v56  ;;  %1196 = vmatmul.f32.gmra.mxu1 %v1820_v26 }
 0x300   : > { %1134 = vmatmul.f32.gmra.mxu0 %v1821_v27  ;;  %1199 = vmatmul.f32.gmra.mxu1 %v1822_v28 }
 0x305   : > { %v1090_v21 = vpop.f32.mrf.mxu0  ;;  %v1155_v33 = vpop.f32.mrf.mxu1 }
 0x306   : > { %1317 = vmatmul.f32.vlgmr.msrb.gmra.mxu3 %v1090_v21 }
 0x308   : > { %1399 = vmatmul.f32.vlgmr.msrb.gmra.mxu0 %v1155_v33 }
 0x30d   : > { %v1093_v44 = vpop.f32.mrf.mxu0  ;;  %v1158_v50 = vpop.f32.mrf.mxu1 }
 0x30e   : > { %1320 = vmatmul.f32.gmra.mxu3 %v1093_v44  ;;  %v1825_v44 = vld [vmem:[%s1899_s26 + $0x10] sm:$0xff] }
 0x310   : > { %1402 = vmatmul.f32.gmra.mxu0 %v1158_v50 }
 0x315   : > { %v1096_v8 = vpop.f32.mrf.mxu0  ;;  %v1161_v58 = vpop.f32.mrf.mxu1 }
 0x316   : > { %1323 = vmatmul.f32.gmra.mxu3 %v1096_v8 }
 0x318   : > { %1405 = vmatmul.f32.gmra.mxu0 %v1161_v58 }
 0x31d   : > { %v1099_v20 = vpop.f32.mrf.mxu0  ;;  %v1164_v30 = vpop.f32.mrf.mxu1 }
 0x31e   : > { %1326 = vmatmul.f32.gmra.mxu3 %v1099_v20 }
 0x320   : > { %1408 = vmatmul.f32.gmra.mxu0 %v1164_v30 }
 0x325   : > { %v1102_v38 = vpop.f32.mrf.mxu0  ;;  %v1167_v11 = vpop.f32.mrf.mxu1 }
 0x326   : > { %1329 = vmatmul.f32.gmra.mxu3 %v1102_v38  ;;  %v1271_v38 = vpop.f32.mrf.mxu2 }
 0x328   : > { %1411 = vmatmul.f32.gmra.mxu0 %v1167_v11 }
 0x32d   : > { %v1105_v54 = vpop.f32.mrf.mxu0  ;;  %v1170_v57 = vpop.f32.mrf.mxu1 }
 0x32e   : > { %1332 = vmatmul.f32.gmra.mxu3 %v1105_v54 }
 0x330   : > { %1414 = vmatmul.f32.gmra.mxu0 %v1170_v57 }
 0x335   : > { %v1108_v22 = vpop.f32.mrf.mxu0  ;;  %v1173_v29 = vpop.f32.mrf.mxu1 }
 0x336   : > { %1335 = vmatmul.f32.gmra.mxu3 %v1108_v22  ;;  %v1826_v22 = vld [vmem:[%s1899_s26 + $0x18] sm:$0xff] }
 0x338   : > { %1417 = vmatmul.f32.gmra.mxu0 %v1173_v29 }
 0x33d   : > { %v1111_v14 = vpop.f32.mrf.mxu0  ;;  %v1176_v19 = vpop.f32.mrf.mxu1 }
 0x33e   : > { %1338 = vmatmul.f32.gmra.mxu3 %v1111_v14 }
 0x340   : > { %1420 = vmatmul.f32.gmra.mxu0 %v1176_v19 }
 0x345   : > { %v1114_v31 = vpop.f32.mrf.mxu0  ;;  %v1179_v59 = vpop.f32.mrf.mxu1 }
 0x346   : > { %1341 = vmatmul.f32.gmra.mxu3 %v1114_v31 }
 0x348   : > { %1423 = vmatmul.f32.gmra.mxu0 %v1179_v59 }
 0x34d   : > { %v1117_v0 = vpop.f32.mrf.mxu0  ;;  %v1182_v34 = vpop.f32.mrf.mxu1 }
 0x34e   : > { %1344 = vmatmul.f32.gmra.mxu3 %v1117_v0 }
 0x350   : > { %1426 = vmatmul.f32.gmra.mxu0 %v1182_v34  ;;  %v1274_v34 = vpop.f32.mrf.mxu2 }
 0x355   : > { %v1120_v35 = vpop.f32.mrf.mxu0  ;;  %v1185_v36 = vpop.f32.mrf.mxu1 }
 0x356   : > { %1347 = vmatmul.f32.gmra.mxu3 %v1120_v35 }
 0x358   : > { %1429 = vmatmul.f32.gmra.mxu0 %v1185_v36 }
 0x35d   : > { %v1123_v37 = vpop.f32.mrf.mxu0  ;;  %v1188_v15 = vpop.f32.mrf.mxu1 }
 0x35e   : > { %1350 = vmatmul.f32.gmra.mxu3 %v1123_v37  ;;  %v1827_v37 = vld [vmem:[%s1899_s26 + $0x20] sm:$0xff] }
 0x360   : > { %1432 = vmatmul.f32.gmra.mxu0 %v1188_v15 }
 0x365   : > { %v1126_v39 = vpop.f32.mrf.mxu0  ;;  %v1191_v12 = vpop.f32.mrf.mxu1 }
 0x366   : > { %1353 = vmatmul.f32.gmra.mxu3 %v1126_v39 }
 0x368   : > { %1435 = vmatmul.f32.gmra.mxu0 %v1191_v12 }
 0x36d   : > { %v1129_v41 = vpop.f32.mrf.mxu0  ;;  %v1194_v43 = vpop.f32.mrf.mxu1 }
 0x36e   : > { %1356 = vmatmul.f32.gmra.mxu3 %v1129_v41 }
 0x370   : > { %1438 = vmatmul.f32.gmra.mxu0 %v1194_v43 }
 0x375   : > { %v1132_v47 = vpop.f32.mrf.mxu0  ;;  %v1197_v46 = vpop.f32.mrf.mxu1 }
 0x376   : > { %1359 = vmatmul.f32.gmra.mxu3 %v1132_v47 }
 0x378   : > { %1441 = vmatmul.f32.gmra.mxu0 %v1197_v46  ;;  %v1277_v46 = vpop.f32.mrf.mxu2 }
 0x37d   : > { %v1135_v48 = vpop.f32.mrf.mxu0  ;;  %v1200_v13 = vpop.f32.mrf.mxu1 }
 0x37e   : > { %1362 = vmatmul.f32.gmra.mxu3 %v1135_v48  ;;  %v1828_v48 = vld [vmem:[%s1899_s26 + $0x28] sm:$0xff] }
 0x380   : > { %1444 = vmatmul.f32.gmra.mxu0 %v1200_v13 }
 0x385   : > { %v1400_v10 = vpop.f32.mrf.mxu0 }
 0x389   : > { %v1318_v52 = vpop.f32.mrf.mxu3 }
 0x38a   : > { %v1319_v53 = vadd.f32 %v1318_v52, %v1253_v40 }
 0x38c   : > { %v1448_v7 = vadd.f32 %v1400_v10, %v1319_v53 }
 0x38d   : > { %v1403_v42 = vpop.f32.mrf.mxu0 }
 0x38e   : > { %v1466_v5 = vmul.f32 %v2902_v9, %v1448_v7 }
 0x390   : > { %v1484_v4 = vadd.f32 %v2907_v6, %v1466_v5  ;;  %v1829_v5 = vld [vmem:[%s1899_s26 + $0x30] sm:$0xff] }
 0x391   : > { %v1321_v3 = vpop.f32.mrf.mxu3 }
 0x392   : > { %v1500_v55 = vadd.f32 %v1823_v18, %v1484_v4  ;;  %v1322_v60 = vadd.f32 %v1321_v3, %v1256_v45 }
 0x394   : > { %v1516_v61 = vmax.f32 %v1500_v55, 0.0  ;;  %v1449_v49 = vadd.f32 %v1403_v42, %v1322_v60 }
 0x395   : > { %v1406_v62 = vpop.f32.mrf.mxu0 }
 0x396   : > { %1532 = vst [vmem:[%s2917_s13] sm:$0xff] %v1516_v61  ;;  %v1467_v63 = vmul.f32 %v2902_v9, %v1449_v49 }
 0x398   : > { %v1485_v16 = vadd.f32 %v2907_v6, %v1467_v63  ;;  %v1830_v63 = vld [vmem:[%s1899_s26 + $0x38] sm:$0xff] }
 0x399   : > { %v1324_v17 = vpop.f32.mrf.mxu3 }
 0x39a   : > { %v1501_v1 = vadd.f32 %v1824_v25, %v1485_v16  ;;  %v1325_v23 = vadd.f32 %v1324_v17, %v1259_v32 }
 0x39c   : > { %v1517_v56 = vmax.f32 %v1501_v1, 0.0  ;;  %v1450_v26 = vadd.f32 %v1406_v62, %v1325_v23 }
 0x39d   : > { %v1409_v27 = vpop.f32.mrf.mxu0 }
 0x39e   : > { %1533 = vst [vmem:[%s2917_s13 + $0x8] sm:$0xff] %v1517_v56  ;;  %v1468_v28 = vmul.f32 %v2902_v9, %v1450_v26 }
 0x3a0   : > { %v1486_v21 = vadd.f32 %v2907_v6, %v1468_v28  ;;  %v1831_v28 = vld [vmem:[%s1899_s26 + $0x40] sm:$0xff] }
 0x3a1   : > { %v1327_v33 = vpop.f32.mrf.mxu3 }
 0x3a2   : > { %v1502_v50 = vadd.f32 %v1825_v44, %v1486_v21  ;;  %v1328_v8 = vadd.f32 %v1327_v33, %v1262_v51 }
 0x3a4   : > { %v1518_v58 = vmax.f32 %v1502_v50, 0.0  ;;  %v1451_v20 = vadd.f32 %v1409_v27, %v1328_v8 }
 0x3a5   : > { %v1412_v30 = vpop.f32.mrf.mxu0 }
 0x3a6   : > { %1534 = vst [vmem:[%s2917_s13 + $0x10] sm:$0xff] %v1518_v58  ;;  %v1469_v11 = vmul.f32 %v2902_v9, %v1451_v20 }
 0x3a8   : > { %v1487_v54 = vadd.f32 %v2907_v6, %v1469_v11  ;;  %v1832_v11 = vld [vmem:[%s1899_s26 + $0x48] sm:$0xff] }
 0x3a9   : > { %v1330_v57 = vpop.f32.mrf.mxu3 }
 0x3aa   : > { %v1503_v29 = vadd.f32 %v1826_v22, %v1487_v54  ;;  %v1331_v14 = vadd.f32 %v1330_v57, %v1265_v2  ;;  %v1280_v2 = vpop.f32.mrf.mxu2 }
 0x3ac   : > { %v1519_v19 = vmax.f32 %v1503_v29, 0.0  ;;  %v1452_v31 = vadd.f32 %v1412_v30, %v1331_v14 }
 0x3ad   : > { %v1415_v59 = vpop.f32.mrf.mxu0 }
 0x3ae   : > { %1535 = vst [vmem:[%s2917_s13 + $0x18] sm:$0xff] %v1519_v19  ;;  %v1470_v0 = vmul.f32 %v2902_v9, %v1452_v31 }
 0x3b0   : > { %v1488_v35 = vadd.f32 %v2907_v6, %v1470_v0 }
 0x3b1   : > { %v1333_v36 = vpop.f32.mrf.mxu3 }
 0x3b2   : > { %v1504_v15 = vadd.f32 %v1827_v37, %v1488_v35  ;;  %v1334_v39 = vadd.f32 %v1333_v36, %v1268_v24  ;;  %v1283_v24 = vpop.f32.mrf.mxu2 }
 0x3b4   : > { %v1520_v12 = vmax.f32 %v1504_v15, 0.0  ;;  %v1453_v40 = vadd.f32 %v1415_v59, %v1334_v39 }
 0x3b5   : > { %v1418_v41 = vpop.f32.mrf.mxu0 }
 0x3b6   : > { %1536 = vst [vmem:[%s2917_s13 + $0x20] sm:$0xff] %v1520_v12  ;;  %v1471_v43 = vmul.f32 %v2902_v9, %v1453_v40 }
 0x3b8   : > { %v1489_v45 = vadd.f32 %v2907_v6, %v1471_v43  ;;  %v1834_v43 = vld [vmem:[%s1899_s26 + $0x58] sm:$0xff] }
 0x3b9   : > { %v1336_v47 = vpop.f32.mrf.mxu3 }
 0x3ba   : > { %v1505_v13 = vadd.f32 %v1828_v48, %v1489_v45  ;;  %v1337_v32 = vadd.f32 %v1336_v47, %v1271_v38  ;;  %v1286_v20 = vpop.f32.mrf.mxu2 }
 0x3bc   : > { %v1521_v10 = vmax.f32 %v1505_v13, 0.0  ;;  %v1454_v51 = vadd.f32 %v1418_v41, %v1337_v32 }
 0x3bd   : > { %v1421_v52 = vpop.f32.mrf.mxu0 }
 0x3be   : > { %1537 = vst [vmem:[%s2917_s13 + $0x28] sm:$0xff] %v1521_v10  ;;  %v1472_v53 = vmul.f32 %v2902_v9, %v1454_v51 }
 0x3c0   : > { %v1490_v7 = vadd.f32 %v2907_v6, %v1472_v53  ;;  %v1835_v53 = vld [vmem:[%s1899_s26 + $0x60] sm:$0xff] }
 0x3c1   : > { %v1339_v42 = vpop.f32.mrf.mxu3 }
 0x3c2   : > { %v1506_v4 = vadd.f32 %v1829_v5, %v1490_v7  ;;  %v1340_v3 = vadd.f32 %v1339_v42, %v1274_v34  ;;  %v1289_v0 = vpop.f32.mrf.mxu2  ;;  %v1833_v34 = vld [vmem:[%s1899_s26 + $0x50] sm:$0xff] }
 0x3c4   : > { %v1522_v18 = vmax.f32 %v1506_v4, 0.0  ;;  %v1455_v55 = vadd.f32 %v1421_v52, %v1340_v3 }
 0x3c5   : > { %v1424_v60 = vpop.f32.mrf.mxu0 }
 0x3c6   : > { %1538 = vst [vmem:[%s2917_s13 + $0x30] sm:$0xff] %v1522_v18  ;;  %v1473_v61 = vmul.f32 %v2902_v9, %v1455_v55 }
 0x3c8   : > { %v1491_v49 = vadd.f32 %v2907_v6, %v1473_v61  ;;  %v1836_v61 = vld [vmem:[%s1899_s26 + $0x68] sm:$0xff] }
 0x3c9   : > { %v1342_v62 = vpop.f32.mrf.mxu3 }
 0x3ca   : > { %v1507_v16 = vadd.f32 %v1830_v63, %v1491_v49  ;;  %v1343_v17 = vadd.f32 %v1342_v62, %v1277_v46  ;;  %v1292_v46 = vpop.f32.mrf.mxu2 }
 0x3cc   : > { %v1523_v25 = vmax.f32 %v1507_v16, 0.0  ;;  %v1456_v1 = vadd.f32 %v1424_v60, %v1343_v17 }
 0x3cd   : > { %v1427_v23 = vpop.f32.mrf.mxu0 }
 0x3ce   : > { %1539 = vst [vmem:[%s2917_s13 + $0x38] sm:$0xff] %v1523_v25  ;;  %v1474_v56 = vmul.f32 %v2902_v9, %v1456_v1 }
 0x3d0   : > { %v1492_v26 = vadd.f32 %v2907_v6, %v1474_v56  ;;  %v1837_v56 = vld [vmem:[%s1899_s26 + $0x70] sm:$0xff] }
 0x3d1   : > { %v1345_v27 = vpop.f32.mrf.mxu3 }
 0x3d2   : > { %v1508_v21 = vadd.f32 %v1831_v28, %v1492_v26  ;;  %v1346_v33 = vadd.f32 %v1345_v27, %v1280_v2  ;;  %v1295_v3 = vpop.f32.mrf.mxu2 }
 0x3d4   : > { %v1524_v44 = vmax.f32 %v1508_v21, 0.0  ;;  %v1457_v50 = vadd.f32 %v1427_v23, %v1346_v33 }
 0x3d5   : > { %v1430_v8 = vpop.f32.mrf.mxu0 }
 0x3d6   : > { %1540 = vst [vmem:[%s2917_s13 + $0x40] sm:$0xff] %v1524_v44  ;;  %v1475_v58 = vmul.f32 %v2902_v9, %v1457_v50  ;;  %v1838_v50 = vld [vmem:[%s1899_s26 + $0x78] sm:$0xff] }
 0x3d8   : > { %v1493_v30 = vadd.f32 %v2907_v6, %v1475_v58 }
 0x3d9   : > { %v1348_v38 = vpop.f32.mrf.mxu3 }
 0x3da   : > { %v1509_v54 = vadd.f32 %v1832_v11, %v1493_v30  ;;  %v1349_v57 = vadd.f32 %v1348_v38, %v1283_v24  ;;  %v1298_v25 = vpop.f32.mrf.mxu2 }
 0x3dc   : > { %v1525_v22 = vmax.f32 %v1509_v54, 0.0  ;;  %v1458_v29 = vadd.f32 %v1430_v8, %v1349_v57 }
 0x3dd   : > { %v1433_v14 = vpop.f32.mrf.mxu0 }
 0x3de   : > { %1541 = vst [vmem:[%s2917_s13 + $0x48] sm:$0xff] %v1525_v22  ;;  %v1476_v19 = vmul.f32 %v2902_v9, %v1458_v29 }
 0x3e0   : > { %v1494_v31 = vadd.f32 %v2907_v6, %v1476_v19 }
 0x3e1   : > { %v1351_v59 = vpop.f32.mrf.mxu3 }
 0x3e2   : > { %v1510_v35 = vadd.f32 %v1833_v34, %v1494_v31  ;;  %v1352_v36 = vadd.f32 %v1351_v59, %v1286_v20 }
 0x3e4   : > { %v1526_v37 = vmax.f32 %v1510_v35, 0.0  ;;  %v1459_v15 = vadd.f32 %v1433_v14, %v1352_v36 }
 0x3e5   : > { %v1436_v39 = vpop.f32.mrf.mxu0 }
 0x3e6   : > { %1542 = vst [vmem:[%s2917_s13 + $0x50] sm:$0xff] %v1526_v37  ;;  %v1477_v12 = vmul.f32 %v2902_v9, %v1459_v15 }
 0x3e8   : > { %v1495_v40 = vadd.f32 %v2907_v6, %v1477_v12 }
 0x3e9   : > { %v1354_v41 = vpop.f32.mrf.mxu3 }
 0x3ea   : > { %v1511_v45 = vadd.f32 %v1834_v43, %v1495_v40  ;;  %v1355_v47 = vadd.f32 %v1354_v41, %v1289_v0 }
 0x3ec   : > { %v1527_v48 = vmax.f32 %v1511_v45, 0.0  ;;  %v1460_v13 = vadd.f32 %v1436_v39, %v1355_v47 }
 0x3ed   : > { %v1439_v32 = vpop.f32.mrf.mxu0 }
 0x3ee   : > { %1543 = vst [vmem:[%s2917_s13 + $0x58] sm:$0xff] %v1527_v48  ;;  %v1478_v10 = vmul.f32 %v2902_v9, %v1460_v13 }
 0x3f0   : > { %v1496_v51 = vadd.f32 %v2907_v6, %v1478_v10 }
 0x3f1   : > { %v1357_v52 = vpop.f32.mrf.mxu3 }
 0x3f2   : > { %v1512_v7 = vadd.f32 %v1835_v53, %v1496_v51  ;;  %v1358_v42 = vadd.f32 %v1357_v52, %v1292_v46 }
 0x3f4   : > { %v1528_v5 = vmax.f32 %v1512_v7, 0.0  ;;  %v1461_v4 = vadd.f32 %v1439_v32, %v1358_v42 }
 0x3f5   : > { %v1442_v18 = vpop.f32.mrf.mxu0 }
 0x3f6   : > { %1544 = vst [vmem:[%s2917_s13 + $0x60] sm:$0xff] %v1528_v5  ;;  %v1479_v2 = vmul.f32 %v2902_v9, %v1461_v4 }
 0x3f8   : > { %v1497_v55 = vadd.f32 %v2907_v6, %v1479_v2 }
 0x3f9   : > { %v1360_v60 = vpop.f32.mrf.mxu3 }
 0x3fa   : > { %v1513_v49 = vadd.f32 %v1836_v61, %v1497_v55  ;;  %v1361_v62 = vadd.f32 %v1360_v60, %v1295_v3 }
 0x3fc   : > { %v1529_v63 = vmax.f32 %v1513_v49, 0.0  ;;  %v1462_v16 = vadd.f32 %v1442_v18, %v1361_v62 }
 0x3fd   : > { %v1445_v24 = vpop.f32.mrf.mxu0 }
 0x3fe   : > { %1545 = vst [vmem:[%s2917_s13 + $0x68] sm:$0xff] %v1529_v63  ;;  %v1480_v17 = vmul.f32 %v2902_v9, %v1462_v16 }
 0x400   : > { %v1498_v1 = vadd.f32 %v2907_v6, %v1480_v17 }
 0x401   : > { %v1363_v23 = vpop.f32.mrf.mxu3 }
 0x402   : > { %v1514_v26 = vadd.f32 %v1837_v56, %v1498_v1  ;;  %v1364_v27 = vadd.f32 %v1363_v23, %v1298_v25 }
 0x404   : > { %v1530_v28 = vmax.f32 %v1514_v26, 0.0  ;;  %v1463_v21 = vadd.f32 %v1445_v24, %v1364_v27 }
 0x406   : > { %1546 = vst [vmem:[%s2917_s13 + $0x70] sm:$0xff] %v1530_v28  ;;  %v1481_v33 = vmul.f32 %v2902_v9, %v1463_v21 }
 0x408   : > { %v1499_v44 = vadd.f32 %v2907_v6, %v1481_v33 }
 0x40a   : > { %v1515_v8 = vadd.f32 %v1838_v50, %v1499_v44 }
 0x40c   : > { %v1531_v58 = vmax.f32 %v1515_v8, 0.0 }
 0x40e   : > { %1547 = vst [vmem:[%s2917_s13 + $0x78] sm:$0xff] %v1531_v58 }
 0x40f PF: > { %s16_s21 = sadd.s32 1, %s1845_s21  }
 0x410   : > { %p13_p4 = scmp.ge.s32.totalorder %s16_s21, 4  }
 0x412   :  { %15 = sbr.rel (!%p13_p4) target bundleno = 1 (0x1), region = 81 }

</bundles_post_ra>
